<compile_context>
chip_gen: v5e
topology: v5e:2x2
jax: 0.10.0
libtpu: 0.0.40
codegen_flags: <defaults>
</compile_context>

<pallas_src>
import functools
import math

import jax
import jax.numpy as jnp
from jax.experimental import pallas as pl
from jax.experimental.pallas import tpu as pltpu


# ----------------------------------------------------------------------------
# Pallas kernel: one batch element of MaskedConv2d (stride=1)
# ----------------------------------------------------------------------------
def _masked_conv2d_kernel(x_ref, w_ref, thr_ref, b_ref, out_ref, xp_ref,
                          *, KH, KW, pad, H_out, W_out):
    """MaskedConv2d forward for one image.

    x_ref  : (1, H, W, Cin)           NHWC activation block
    w_ref  : (KH*KW*Cin, Cout)        raw weight, tap-major / Cin inner
    thr_ref: (1,) f32 in SMEM         mask threshold
    b_ref  : (Cout, 1)                bias
    out_ref: (1, Cout, H_out*W_out)   lane-dense output slab
    xp_ref : (Hp, Wp, Cin) VMEM       zero-padded image scratch
    """
    _, H, W, Cin = x_ref.shape
    Cout = out_ref.shape[1]

    # --- MaskedConv2d masking: mask = BinaryStep(|W| - threshold) ------------
    w = w_ref[...]
    thr = thr_ref[0]
    mask = (jnp.abs(w) - thr > 0.0).astype(jnp.float32)
    ratio = jnp.sum(mask) / float(mask.size)
    # ratio <= 0.01 fallback: threshold reset to 0, mask recomputed
    mask0 = (jnp.abs(w) > 0.0).astype(jnp.float32)
    fb = (ratio <= 0.01).astype(jnp.float32)
    wm = w * (fb * mask0 + (1.0 - fb) * mask)
    # TODO(synk): the in-place self.weight.data / self.mask buffer mutations
    # are training-time side effects with no impact on the forward output.

    # --- fold spatial padding into the kernel (zero-init VMEM scratch) -------
    if pad > 0:
        xp_ref[...] = jnp.zeros_like(xp_ref)
        xp_ref[pad:pad + H, pad:pad + W, :] = x_ref[0]
    else:
        xp_ref[...] = x_ref[0]
    xfull = xp_ref[...]                                   # (Hp, Wp, Cin)

    # --- conv: KH*KW taps of (HW, Cin) x (Cin, Cout) MXU dots, f32 acc -------
    acc = jnp.zeros((H_out * W_out, Cout), jnp.float32)
    for kh in range(KH):                                  # static 3x3 unroll
        for kw in range(KW):
            patch = xfull[kh:kh + H_out, kw:kw + W_out, :]
            patch2d = patch.reshape(H_out * W_out, Cin)
            tap = (kh * KW + kw) * Cin
            acc = acc + jnp.dot(patch2d, wm[tap:tap + Cin, :],
                                preferred_element_type=jnp.float32)
    # TODO(synk): stride>1 / dilation>1 / groups>1 would need strided / grouped
    # window loads; the demo configuration uses the default stride=1 path.

    # lane-dense store: (Cout, H_out*W_out) puts the wide spatial dim on lanes
    out_ref[0] = jnp.transpose(acc) + b_ref[...]


# ----------------------------------------------------------------------------
# Wrapper
# ----------------------------------------------------------------------------
def masked_conv2d(x_nchw, weight_oihw, bias, threshold, *, stride=1, padding=0,
                  dilation=1, groups=1):
    assert stride == 1 and dilation == 1 and groups == 1, \
        "demo implements the stride=1 / dilation=1 / groups=1 path"
    N, Cin, H, W = x_nchw.shape
    Cout, _, KH, KW = weight_oihw.shape
    Hp, Wp = H + 2 * padding, W + 2 * padding
    H_out, W_out = Hp - KH + 1, Wp - KW + 1

    x = jnp.transpose(x_nchw, (0, 2, 3, 1)).astype(jnp.float32)        # NHWC
    # weight as (KH*KW*Cin, Cout): tap-major, Cin inner -> matches kernel taps
    w2d = jnp.transpose(weight_oihw, (2, 3, 1, 0)).reshape(
        KH * KW * Cin, Cout).astype(jnp.float32)
    if bias is None:
        bias = jnp.zeros((Cout,), jnp.float32)
    b2d = bias.reshape(Cout, 1).astype(jnp.float32)
    thr = jnp.asarray(threshold, jnp.float32).reshape(1)

    kernel = functools.partial(_masked_conv2d_kernel, KH=KH, KW=KW,
                               pad=padding, H_out=H_out, W_out=W_out)
    out = pl.pallas_call(
        kernel,
        out_shape=jax.ShapeDtypeStruct((N, Cout, H_out * W_out), jnp.float32),
        grid=(N,),
        in_specs=[
            pl.BlockSpec((1, H, W, Cin), lambda n: (n, 0, 0, 0)),
            pl.BlockSpec((KH * KW * Cin, Cout), lambda n: (0, 0)),
            pl.BlockSpec(memory_space=pltpu.MemorySpace.SMEM),          # thr
            pl.BlockSpec((Cout, 1), lambda n: (0, 0)),
        ],
        out_specs=pl.BlockSpec((1, Cout, H_out * W_out), lambda n: (n, 0, 0)),
        scratch_shapes=[pltpu.VMEM((Hp, Wp, Cin), jnp.float32)],
        compiler_params=pltpu.CompilerParams(
            dimension_semantics=("parallel",)),   # v7x megacore shards batch
    )(x, w2d, thr, b2d)

    return out.reshape(N, Cout, H_out, W_out)     # already NCHW


# ----------------------------------------------------------------------------
# Demo / self-check
# ----------------------------------------------------------------------------
if __name__ == "__main__":
    key = jax.random.PRNGKey(0)
    k_x, k_w, k_b = jax.random.split(key, 3)

    N, in_c, out_c, H, W = 2, 4, 8, 16, 16
    KH = KW = 3
    padding = 1

    x = jax.random.normal(k_x, (N, in_c, H, W), jnp.float32)

    # reset_parameters(): kaiming_uniform_(a=sqrt(5)) -> U(-1/sqrt(fan_in), +)
    fan_in = in_c * KH * KW
    bound = 1.0 / math.sqrt(fan_in)
    weight = jax.random.uniform(k_w, (out_c, in_c, KH, KW), jnp.float32,
                                -bound, bound)
    bias = jax.random.uniform(k_b, (out_c,), jnp.float32, -bound, bound)
    threshold = jnp.zeros((1,), jnp.float32)               # init to 0

    fwd = jax.jit(functools.partial(masked_conv2d, stride=1, padding=padding))
    out = jax.block_until_ready(fwd(x, weight, bias, threshold))

    assert out.shape == (N, out_c, H, W), out.shape
    assert out.dtype == jnp.float32
    assert bool(jnp.all(jnp.isfinite(out)))

    # reference: masked-weight conv2d via XLA at highest precision
    mask = (jnp.abs(weight) - threshold[0] > 0.0).astype(jnp.float32)
    ref = jax.lax.conv_general_dilated(
        x, weight * mask, window_strides=(1, 1),
        padding=((padding, padding), (padding, padding)),
        dimension_numbers=("NCHW", "OIHW", "NCHW"),
        precision=jax.lax.Precision.HIGHEST) + bias.reshape(1, out_c, 1, 1)
    assert bool(jnp.allclose(out, ref, atol=1e-3, rtol=1e-3)), \
        float(jnp.max(jnp.abs(out - ref)))

    print("KERNEL_OK")
</pallas_src>

<mosaic_0001>
module attributes {stable_mosaic.version = 11 : i64} {
  func.func @_masked_conv2d_kernel(%arg0: i32, %arg1: memref<1x16x16x4xf32, #tpu.memory_space<vmem>>, %arg2: memref<36x8xf32, #tpu.memory_space<vmem>>, %arg3: memref<1xf32, #tpu.memory_space<smem>>, %arg4: memref<8x1xf32, #tpu.memory_space<vmem>>, %arg5: memref<1x8x256xf32, #tpu.memory_space<vmem>>, %arg6: memref<18x18x4xf32, #tpu.memory_space<vmem>>) attributes {dimension_semantics = [#tpu.dimension_semantics<parallel>], iteration_bounds = array<i64: 2>, scalar_prefetch = 0 : i64, scratch_operands = 1 : i64, tpu.core_type = #tpu.core_type<tc>, window_params = [{transform_indices = @transform_0, window_bounds = array<i64: 1, 16, 16, 4>}, {pipeline_mode = #tpu.pipeline_mode<synchronous>, transform_indices = @transform_1, window_bounds = array<i64: 36, 8>}, {transform_indices = @transform_2, window_bounds = array<i64: 1>}, {pipeline_mode = #tpu.pipeline_mode<synchronous>, transform_indices = @transform_3, window_bounds = array<i64: 8, 1>}, {transform_indices = @transform_4, window_bounds = array<i64: 1, 8, 256>}]} {
    %c0 = arith.constant 0 : index
    %c0_0 = arith.constant 0 : index
    %0 = vector.load %arg2[%c0, %c0_0] : memref<36x8xf32, #tpu.memory_space<vmem>>, vector<36x8xf32>
    %c0_1 = arith.constant 0 : index
    %1 = memref.load %arg3[%c0_1] : memref<1xf32, #tpu.memory_space<smem>>
    %2 = math.absf %0 : vector<36x8xf32>
    %3 = vector.broadcast %1 : f32 to vector<36x8xf32>
    %4 = arith.subf %2, %3 : vector<36x8xf32>
    %cst = arith.constant 0.000000e+00 : f32
    %5 = vector.broadcast %cst : f32 to vector<36x8xf32>
    %6 = arith.cmpf ogt, %4, %5 : vector<36x8xf32>
    %7 = arith.extui %6 : vector<36x8xi1> to vector<36x8xi32>
    %8 = arith.sitofp %7 : vector<36x8xi32> to vector<36x8xf32>
    %9 = vector.shape_cast %8 : vector<36x8xf32> to vector<1x36x8xf32>
    %cst_2 = arith.constant dense<0.000000e+00> : vector<1xf32>
    %10 = vector.multi_reduction <add>, %9, %cst_2 [1, 2] : vector<1x36x8xf32> to vector<1xf32>
    %11 = vector.shape_cast %10 : vector<1xf32> to vector<1x1x1xf32>
    %12 = vector.extract %11[0, 0, 0] : f32 from vector<1x1x1xf32>
    %cst_3 = arith.constant 2.880000e+02 : f32
    %13 = arith.divf %12, %cst_3 : f32
    %14 = math.absf %0 : vector<36x8xf32>
    %cst_4 = arith.constant 0.000000e+00 : f32
    %15 = vector.broadcast %cst_4 : f32 to vector<36x8xf32>
    %16 = arith.cmpf ogt, %14, %15 : vector<36x8xf32>
    %17 = arith.extui %16 : vector<36x8xi1> to vector<36x8xi32>
    %18 = arith.sitofp %17 : vector<36x8xi32> to vector<36x8xf32>
    %cst_5 = arith.constant 0.00999999977 : f32
    %19 = arith.cmpf ole, %13, %cst_5 : f32
    %20 = arith.extui %19 : i1 to i32
    %21 = arith.sitofp %20 : i32 to f32
    %22 = vector.broadcast %21 : f32 to vector<36x8xf32>
    %23 = arith.mulf %22, %18 : vector<36x8xf32>
    %cst_6 = arith.constant 1.000000e+00 : f32
    %24 = arith.subf %cst_6, %21 : f32
    %25 = vector.broadcast %24 : f32 to vector<36x8xf32>
    %26 = arith.mulf %25, %8 : vector<36x8xf32>
    %27 = arith.addf %23, %26 : vector<36x8xf32>
    %28 = arith.mulf %0, %27 : vector<36x8xf32>
    %cst_7 = arith.constant 0.000000e+00 : f32
    %29 = vector.broadcast %cst_7 : f32 to vector<18x18x4xf32>
    %c0_8 = arith.constant 0 : index
    %c0_9 = arith.constant 0 : index
    %c0_10 = arith.constant 0 : index
    %30 = vector.load %arg6[%c0_8, %c0_9, %c0_10] : memref<18x18x4xf32, #tpu.memory_space<vmem>>, vector<18x18x4xf32>
    tpu.vector_store %arg6[%c0_8, %c0_9, %c0_10], %29 {strides = array<i32>} : memref<18x18x4xf32, #tpu.memory_space<vmem>>, vector<18x18x4xf32>,
    %c0_11 = arith.constant 0 : index
    %c0_12 = arith.constant 0 : index
    %c0_13 = arith.constant 0 : index
    %c0_14 = arith.constant 0 : index
    %31 = vector.load %arg1[%c0_11, %c0_12, %c0_13, %c0_14] : memref<1x16x16x4xf32, #tpu.memory_space<vmem>>, vector<1x16x16x4xf32>
    %32 = vector.shape_cast %31 : vector<1x16x16x4xf32> to vector<16x16x4xf32>
    %c1 = arith.constant 1 : index
    %c1_15 = arith.constant 1 : index
    %c0_16 = arith.constant 0 : index
    %33 = vector.load %arg6[%c1, %c1_15, %c0_16] : memref<18x18x4xf32, #tpu.memory_space<vmem>>, vector<16x16x4xf32>
    tpu.vector_store %arg6[%c1, %c1_15, %c0_16], %32 {strides = array<i32>} : memref<18x18x4xf32, #tpu.memory_space<vmem>>, vector<16x16x4xf32>,
    %c0_17 = arith.constant 0 : index
    %c0_18 = arith.constant 0 : index
    %c0_19 = arith.constant 0 : index
    %34 = vector.load %arg6[%c0_17, %c0_18, %c0_19] : memref<18x18x4xf32, #tpu.memory_space<vmem>>, vector<18x18x4xf32>
    %cst_20 = arith.constant 0.000000e+00 : f32
    %35 = vector.broadcast %cst_20 : f32 to vector<256x8xf32>
    %36 = vector.extract_strided_slice %34 {offsets = [0, 0, 0], sizes = [16, 16, 4], strides = [1, 1, 1]} : vector<18x18x4xf32> to vector<16x16x4xf32>
    %37 = vector.shape_cast %36 : vector<16x16x4xf32> to vector<256x4xf32>
    %38 = vector.extract_strided_slice %28 {offsets = [0, 0], sizes = [4, 8], strides = [1, 1]} : vector<36x8xf32> to vector<4x8xf32>
    %cst_21 = arith.constant dense<0.000000e+00> : vector<256x8xf32>
    %39 = tpu.matmul %37, %38, %cst_21 {dimension_numbers = #tpu.dot_dimension_numbers<[1], [0], [0], [1], [0, 0, 1, 1], [], []>} : vector<256x4xf32>, vector<4x8xf32>, vector<256x8xf32> -> vector<256x8xf32>
    %40 = arith.addf %35, %39 : vector<256x8xf32>
    %41 = vector.extract_strided_slice %34 {offsets = [0, 1, 0], sizes = [16, 16, 4], strides = [1, 1, 1]} : vector<18x18x4xf32> to vector<16x16x4xf32>
    %42 = vector.shape_cast %41 : vector<16x16x4xf32> to vector<256x4xf32>
    %43 = vector.extract_strided_slice %28 {offsets = [4, 0], sizes = [4, 8], strides = [1, 1]} : vector<36x8xf32> to vector<4x8xf32>
    %cst_22 = arith.constant dense<0.000000e+00> : vector<256x8xf32>
    %44 = tpu.matmul %42, %43, %cst_22 {dimension_numbers = #tpu.dot_dimension_numbers<[1], [0], [0], [1], [0, 0, 1, 1], [], []>} : vector<256x4xf32>, vector<4x8xf32>, vector<256x8xf32> -> vector<256x8xf32>
    %45 = arith.addf %40, %44 : vector<256x8xf32>
    %46 = vector.extract_strided_slice %34 {offsets = [0, 2, 0], sizes = [16, 16, 4], strides = [1, 1, 1]} : vector<18x18x4xf32> to vector<16x16x4xf32>
    %47 = vector.shape_cast %46 : vector<16x16x4xf32> to vector<256x4xf32>
    %48 = vector.extract_strided_slice %28 {offsets = [8, 0], sizes = [4, 8], strides = [1, 1]} : vector<36x8xf32> to vector<4x8xf32>
    %cst_23 = arith.constant dense<0.000000e+00> : vector<256x8xf32>
    %49 = tpu.matmul %47, %48, %cst_23 {dimension_numbers = #tpu.dot_dimension_numbers<[1], [0], [0], [1], [0, 0, 1, 1], [], []>} : vector<256x4xf32>, vector<4x8xf32>, vector<256x8xf32> -> vector<256x8xf32>
    %50 = arith.addf %45, %49 : vector<256x8xf32>
    %51 = vector.extract_strided_slice %34 {offsets = [1, 0, 0], sizes = [16, 16, 4], strides = [1, 1, 1]} : vector<18x18x4xf32> to vector<16x16x4xf32>
    %52 = vector.shape_cast %51 : vector<16x16x4xf32> to vector<256x4xf32>
    %53 = vector.extract_strided_slice %28 {offsets = [12, 0], sizes = [4, 8], strides = [1, 1]} : vector<36x8xf32> to vector<4x8xf32>
    %cst_24 = arith.constant dense<0.000000e+00> : vector<256x8xf32>
    %54 = tpu.matmul %52, %53, %cst_24 {dimension_numbers = #tpu.dot_dimension_numbers<[1], [0], [0], [1], [0, 0, 1, 1], [], []>} : vector<256x4xf32>, vector<4x8xf32>, vector<256x8xf32> -> vector<256x8xf32>
    %55 = arith.addf %50, %54 : vector<256x8xf32>
    %56 = vector.extract_strided_slice %34 {offsets = [1, 1, 0], sizes = [16, 16, 4], strides = [1, 1, 1]} : vector<18x18x4xf32> to vector<16x16x4xf32>
    %57 = vector.shape_cast %56 : vector<16x16x4xf32> to vector<256x4xf32>
    %58 = vector.extract_strided_slice %28 {offsets = [16, 0], sizes = [4, 8], strides = [1, 1]} : vector<36x8xf32> to vector<4x8xf32>
    %cst_25 = arith.constant dense<0.000000e+00> : vector<256x8xf32>
    %59 = tpu.matmul %57, %58, %cst_25 {dimension_numbers = #tpu.dot_dimension_numbers<[1], [0], [0], [1], [0, 0, 1, 1], [], []>} : vector<256x4xf32>, vector<4x8xf32>, vector<256x8xf32> -> vector<256x8xf32>
    %60 = arith.addf %55, %59 : vector<256x8xf32>
    %61 = vector.extract_strided_slice %34 {offsets = [1, 2, 0], sizes = [16, 16, 4], strides = [1, 1, 1]} : vector<18x18x4xf32> to vector<16x16x4xf32>
    %62 = vector.shape_cast %61 : vector<16x16x4xf32> to vector<256x4xf32>
    %63 = vector.extract_strided_slice %28 {offsets = [20, 0], sizes = [4, 8], strides = [1, 1]} : vector<36x8xf32> to vector<4x8xf32>
    %cst_26 = arith.constant dense<0.000000e+00> : vector<256x8xf32>
    %64 = tpu.matmul %62, %63, %cst_26 {dimension_numbers = #tpu.dot_dimension_numbers<[1], [0], [0], [1], [0, 0, 1, 1], [], []>} : vector<256x4xf32>, vector<4x8xf32>, vector<256x8xf32> -> vector<256x8xf32>
    %65 = arith.addf %60, %64 : vector<256x8xf32>
    %66 = vector.extract_strided_slice %34 {offsets = [2, 0, 0], sizes = [16, 16, 4], strides = [1, 1, 1]} : vector<18x18x4xf32> to vector<16x16x4xf32>
    %67 = vector.shape_cast %66 : vector<16x16x4xf32> to vector<256x4xf32>
    %68 = vector.extract_strided_slice %28 {offsets = [24, 0], sizes = [4, 8], strides = [1, 1]} : vector<36x8xf32> to vector<4x8xf32>
    %cst_27 = arith.constant dense<0.000000e+00> : vector<256x8xf32>
    %69 = tpu.matmul %67, %68, %cst_27 {dimension_numbers = #tpu.dot_dimension_numbers<[1], [0], [0], [1], [0, 0, 1, 1], [], []>} : vector<256x4xf32>, vector<4x8xf32>, vector<256x8xf32> -> vector<256x8xf32>
    %70 = arith.addf %65, %69 : vector<256x8xf32>
    %71 = vector.extract_strided_slice %34 {offsets = [2, 1, 0], sizes = [16, 16, 4], strides = [1, 1, 1]} : vector<18x18x4xf32> to vector<16x16x4xf32>
    %72 = vector.shape_cast %71 : vector<16x16x4xf32> to vector<256x4xf32>
    %73 = vector.extract_strided_slice %28 {offsets = [28, 0], sizes = [4, 8], strides = [1, 1]} : vector<36x8xf32> to vector<4x8xf32>
    %cst_28 = arith.constant dense<0.000000e+00> : vector<256x8xf32>
    %74 = tpu.matmul %72, %73, %cst_28 {dimension_numbers = #tpu.dot_dimension_numbers<[1], [0], [0], [1], [0, 0, 1, 1], [], []>} : vector<256x4xf32>, vector<4x8xf32>, vector<256x8xf32> -> vector<256x8xf32>
    %75 = arith.addf %70, %74 : vector<256x8xf32>
    %76 = vector.extract_strided_slice %34 {offsets = [2, 2, 0], sizes = [16, 16, 4], strides = [1, 1, 1]} : vector<18x18x4xf32> to vector<16x16x4xf32>
    %77 = vector.shape_cast %76 : vector<16x16x4xf32> to vector<256x4xf32>
    %78 = vector.extract_strided_slice %28 {offsets = [32, 0], sizes = [4, 8], strides = [1, 1]} : vector<36x8xf32> to vector<4x8xf32>
    %cst_29 = arith.constant dense<0.000000e+00> : vector<256x8xf32>
    %79 = tpu.matmul %77, %78, %cst_29 {dimension_numbers = #tpu.dot_dimension_numbers<[1], [0], [0], [1], [0, 0, 1, 1], [], []>} : vector<256x4xf32>, vector<4x8xf32>, vector<256x8xf32> -> vector<256x8xf32>
    %80 = arith.addf %75, %79 : vector<256x8xf32>
    %81 = tpu.transpose %80, [1, 0] : vector<256x8xf32> -> vector<8x256xf32>
    %c0_30 = arith.constant 0 : index
    %c0_31 = arith.constant 0 : index
    %82 = vector.load %arg4[%c0_30, %c0_31] : memref<8x1xf32, #tpu.memory_space<vmem>>, vector<8x1xf32>
    %83 = vector.broadcast %82 : vector<8x1xf32> to vector<8x256xf32>
    %84 = arith.addf %81, %83 : vector<8x256xf32>
    %c0_32 = arith.constant 0 : index
    %c0_33 = arith.constant 0 : index
    %c0_34 = arith.constant 0 : index
    %85 = vector.load %arg5[%c0_32, %c0_33, %c0_34] : memref<1x8x256xf32, #tpu.memory_space<vmem>>, vector<1x8x256xf32>
    %86 = vector.shape_cast %85 : vector<1x8x256xf32> to vector<8x256xf32>
    %87 = vector.shape_cast %84 : vector<8x256xf32> to vector<1x8x256xf32>
    tpu.vector_store %arg5[%c0_32, %c0_33, %c0_34], %87 {strides = array<i32>} : memref<1x8x256xf32, #tpu.memory_space<vmem>>, vector<1x8x256xf32>,
    return
  }
  func.func @transform_0(%arg0: i32) -> (i32, i32, i32, i32) {
    %c0_i32 = arith.constant 0 : i32
    %c0_i32_0 = arith.constant 0 : i32
    %c0_i32_1 = arith.constant 0 : i32
    %c0_i32_2 = arith.constant 0 : i32
    return %arg0, %c0_i32, %c0_i32_0, %c0_i32_1 : i32, i32, i32, i32
  }
  func.func @transform_1(%arg0: i32) -> (i32, i32) {
    %c0_i32 = arith.constant 0 : i32
    %c0_i32_0 = arith.constant 0 : i32
    %c0_i32_1 = arith.constant 0 : i32
    return %c0_i32, %c0_i32_0 : i32, i32
  }
  func.func @transform_2(%arg0: i32) -> i32 {
    %c0_i32 = arith.constant 0 : i32
    %c0_i32_0 = arith.constant 0 : i32
    return %c0_i32 : i32
  }
  func.func @transform_3(%arg0: i32) -> (i32, i32) {
    %c0_i32 = arith.constant 0 : i32
    %c0_i32_0 = arith.constant 0 : i32
    %c0_i32_1 = arith.constant 0 : i32
    return %c0_i32, %c0_i32_0 : i32, i32
  }
  func.func @transform_4(%arg0: i32) -> (i32, i32, i32) {
    %c0_i32 = arith.constant 0 : i32
    %c0_i32_0 = arith.constant 0 : i32
    %c0_i32_1 = arith.constant 0 : i32
    return %arg0, %c0_i32, %c0_i32_0 : i32, i32, i32
  }
}

</mosaic_0001>

<bundles_post_ra>
// kernel: masked_conv2d.1
= control target key start
LH: loop header
LB: loop body
LE: loop exit
PB: predicated region body
PF: predicated region fallthrough
CT: control target
= control target key end

     0   :  { %s2731_s17 = smov 0   ;;  %s4178_s0 = inlined_call_operand.vmem [shape: f32[2,16,16,4], index: 0, kind: input, shape index: {}]   ;;  %s4179_s1 = inlined_call_operand.vmem [shape: f32[36,8], index: 1, kind: input, shape index: {}]   ;;  %s4180_s2 = inlined_call_operand.<no memory space> [shape: f32[1], index: 2, kind: input, shape index: {}]   ;;  %s4181_s3 = inlined_call_operand.vmem [shape: f32[8,1], index: 3, kind: input, shape index: {}]   ;;  %s4182_s4 = inlined_call_operand.vmem [shape: f32[2,8,256], index: 4, kind: output, shape index: {}]  }
   0x1   :  { %9 = sst [smem:[#allocation3]] %s4180_s2 }
   0x2 LB: > { %s2326_s18 = sadd.s32 4294967295, %s2698_s17   ;;  %p2330_p0 = scmp.ge.s32.totalorder %s2698_s17, 1  ;;  %s2698_s17 = sphi %s2731_s17, %s15_s17  }
   0x3   : > { %p163_p1 = scmp.lt.s32.totalorder %s2698_s17, 3 }
   0x5   : > { %p164_p2 = pnand %p2330_p0, %p163_p1 }
   0x7   : > { %167 = sbr.rel (%p164_p2) target bundleno = 991 (0x3df), region = 36 }
   0xc   : > { %v2742_v0 = vld [vmem:[%s4179_s1] sm:$0xff]  ;;  %v2747_v1 = vld [vmem:[%s4179_s1 + $0x8] sm:$0xff]  ;;  %v2752_v2 = vld [vmem:[%s4179_s1 + $0x10] sm:$0xff]  ;;  %s204_s24 = sld [smem:[#allocation3]]  ;;  %vm231_vm0 = vcmask 64512   ;;  %v2700_v16 = vmov 0.0  }
   0xd   : > { %v2757_v3 = vld [vmem:[%s4179_s1 + $0x18] sm:$0xff]  ;;  %v2762_v4 = vld [vmem:[%s4179_s1 + $0x20] sm:$0xf]  ;;  %v205_v5 = vand.u32 2147483647, %v2742_v0  ;;  %vm239_vm6 = vcmask 60416  }
   0xe   : > { %v206_v6 = vand.u32 2147483647, %v2747_v1  ;;  %v207_v7 = vand.u32 2147483647, %v2752_v2  ;;  %v208_v8 = vand.u32 2147483647, %v2757_v3 }
   0xf   : > { %v209_v9 = vand.u32 2147483647, %v2762_v4  ;;  %v2701_v31 = vmov 288.0   ;;  %p189_p3 = scmp.lt.s32.totalorder %s2326_s18, 1  ;;  %vm301_vm8 = vcmask 31744   ;;  %vm304_vm9 = vcmask 25600  }
  0x10   : > { %2666 = vrcp.f32 %v2701_v31  ;;  %315 = vst.msk [vmem:[#allocation2 + $0x60] sm:$0xff] %vm301_vm8, %v2700_v16  ;;  %vm260_vm10 = vcmp.gt.f32.partialorder %v205_v5, 0.0  ;;  %vm261_vm11 = vcmp.gt.f32.partialorder %v206_v6, 0.0  ;;  %vm262_vm12 = vcmp.gt.f32.partialorder %v207_v7, 0.0 }
  0x11   : > { %s4391_s18 = smov (!%p189_p3, %s2326_s18), 1  ;;  %316 = vst.msk [vmem:[#allocation2 + $0x68] sm:$0xff] %vm301_vm8, %v2700_v16  ;;  %v2340_v47 = vsel %vm260_vm10, 1.0, %v2700_v16  ;;  %v2341_v49 = vsel %vm261_vm11, 1.0, %v2700_v16  ;;  %v2342_v50 = vsel %vm262_vm12, 1.0, %v2700_v16  ;;  %vm264_vm13 = vcmp.gt.f32.partialorder %v209_v9, 0.0 }
  0x12   : > { %v210_v10 = vstv %s204_s24  ;;  %s2644_s29 = sshll.u32 %s4391_s18, 8  ;;  %317 = vst.msk [vmem:[#allocation2 + $0x70] sm:$0x3] %vm304_vm9, %v2700_v16  ;;  %v2344_v60 = vsel %vm264_vm13, 1.0, %v2700_v16  ;;  %vm524_vm14 = vcmask 1046528   ;;  %vm671_vm15 = vcmask 1043456  }
  0x13   : > { %v211_v11 = vsub.f32 %v205_v5, %v210_v10  ;;  %v212_v12 = vsub.f32 %v206_v6, %v210_v10  ;;  %v213_v13 = vsub.f32 %v207_v7, %v210_v10  ;;  %v214_v14 = vsub.f32 %v208_v8, %v210_v10  ;;  %s2813_s6 = scalar_lea.vmem %s4178_s0, %s2644_s29  ;;  %302 = vst.msk [vmem:[#allocation2] sm:$0xff] %vm301_vm8, %v2700_v16  ;;  %s2645_s15 = sshll.u32 %s4391_s18, 4 }
  0x14   : > { %v215_v15 = vsub.f32 %v209_v9, %v210_v10  ;;  %v363_v45 = vld [vmem:[%s2813_s6 + $0x30] sm:$0xff]  ;;  %v364_v46 = vld [vmem:[%s2813_s6 + $0x38] sm:$0xff]  ;;  %303 = vst.msk [vmem:[#allocation2 + $0x8] sm:$0xff] %vm301_vm8, %v2700_v16  ;;  %s198_s20 = scalar_lea.vmem %s4182_s4, %s2645_s15 }
  0x15   : > { %vm216_vm1 = vcmp.gt.f32.partialorder %v211_v11, 0.0  ;;  %vm217_vm2 = vcmp.gt.f32.partialorder %v212_v12, 0.0  ;;  %vm218_vm3 = vcmp.gt.f32.partialorder %v213_v13, 0.0  ;;  %vm219_vm4 = vcmp.gt.f32.partialorder %v214_v14, 0.0  ;;  %396 = vst.msk [vmem:[#allocation2 + $0x61] sm:$0xff] %vm301_vm8, %v363_v45  ;;  %v380_v31 = vld [vmem:[%s2813_s6 + $0xb8] sm:$0xff] }
  0x16   : > { %vm220_vm5 = vcmp.gt.f32.partialorder %v215_v15, 0.0  ;;  %v2780_v17 = vsel %vm216_vm1, 1.0, %v2700_v16  ;;  %v2783_v18 = vsel %vm217_vm2, 1.0, %v2700_v16  ;;  %v2786_v19 = vsel %vm218_vm3, 1.0, %v2700_v16  ;;  %v2667_v32 = vpop.eup %2666  ;;  %397 = vst.msk [vmem:[#allocation2 + $0x69] sm:$0xff] %vm301_vm8, %v364_v46 }
  0x17   : > { %v2789_v20 = vsel %vm219_vm4, 1.0, %v2700_v16  ;;  %v232_v21 = vsel %vm231_vm0, %v2780_v17, 0.0  ;;  %v233_v22 = vsel %vm231_vm0, %v2783_v18, 0.0  ;;  %v2796_v23 = vsel %vm220_vm5, 1.0, %v2700_v16  ;;  %305 = vst.msk [vmem:[#allocation2 + $0x10] sm:$0x3] %vm304_vm9, %v2700_v16 }
  0x18   : > { %v234_v24 = vadd.f32 %v233_v22, %v232_v21  ;;  %v235_v25 = vsel %vm231_vm0, %v2786_v19, 0.0  ;;  %v237_v26 = vsel %vm231_vm0, %v2789_v20, 0.0  ;;  %v240_v28 = vsel %vm239_vm6, %v2796_v23, 0.0  ;;  %306 = vst.msk [vmem:[#allocation2 + $0x18] sm:$0xff] %vm301_vm8, %v2700_v16 }
  0x19   : > { %v252_v33 = vmul.f32 288.0, %v2667_v32  ;;  %vm256_vm7 = vweird.f32 %v2667_v32  ;;  %307 = vst.msk [vmem:[#allocation2 + $0x20] sm:$0xff] %vm301_vm8, %v2700_v16  ;;  %vm263_vm0 = vcmp.gt.f32.partialorder %v208_v8, 0.0  ;;  %vm966_vm1 = vcmask 1045504  }
  0x1a   : > { %v236_v27 = vadd.f32 %v235_v25, %v234_v24  ;;  %308 = vst.msk [vmem:[#allocation2 + $0x28] sm:$0x3] %vm304_vm9, %v2700_v16  ;;  %v2922_v7 = vld [vmem:[#allocation2] sm:$0xff]  ;;  %v2343_v8 = vsel %vm263_vm0, 1.0, %v2700_v16 }
  0x1b   : > { %v253_v34 = vsub.f32 1.0, %v252_v33  ;;  %309 = vst.msk [vmem:[#allocation2 + $0x30] sm:$0xff] %vm301_vm8, %v2700_v16  ;;  %v2924_v9 = vld [vmem:[#allocation2 + $0x8] sm:$0xff]  ;;  %v365_v33 = vld [vmem:[%s2813_s6 + $0x40] sm:$0xff] }
  0x1c   : > { %v238_v29 = vadd.f32 %v237_v26, %v236_v27  ;;  %310 = vst.msk [vmem:[#allocation2 + $0x38] sm:$0xff] %vm301_vm8, %v2700_v16  ;;  %v2901_v54 = vld [vmem:[#allocation2 + $0x60] sm:$0xff]  ;;  %v371_v26 = vld [vmem:[%s2813_s6 + $0x70] sm:$0xff] }
  0x1d   : > { %v254_v38 = vmul.f32 %v2667_v32, %v253_v34  ;;  %311 = vst.msk [vmem:[#allocation2 + $0x40] sm:$0x3] %vm304_vm9, %v2700_v16  ;;  %v2903_v55 = vld [vmem:[#allocation2 + $0x68] sm:$0xff]  ;;  %v545_v63 = vrot.slane %v2901_v54, 1 }
  0x1e   : > { %v241_v30 = vadd.f32 %v240_v28, %v238_v29  ;;  %312 = vst.msk [vmem:[#allocation2 + $0x48] sm:$0xff] %vm301_vm8, %v2700_v16  ;;  %v546_v5 = vrot.slane %v2903_v55, 1  ;;  %v372_v28 = vld [vmem:[%s2813_s6 + $0x78] sm:$0xff]  ;;  %v379_v29 = vld [vmem:[%s2813_s6 + $0xb0] sm:$0xff]  ;;  %v366_v34 = vld [vmem:[%s2813_s6 + $0x48] sm:$0xff] }
  0x1f   : > { %v255_v41 = vadd.f32 %v2667_v32, %v254_v38  ;;  %313 = vst.msk [vmem:[#allocation2 + $0x50] sm:$0xff] %vm301_vm8, %v2700_v16  ;;  %v382_v38 = vld [vmem:[%s2813_s6 + $0xc8] sm:$0xff] }
  0x20   : > { %242 = vadd.xlane.f32.xlu0 %v241_v30  ;;  %314 = vst.msk [vmem:[#allocation2 + $0x58] sm:$0x3] %vm304_vm9, %v2700_v16 }
  0x21   : > { %v257_v44 = vsel %vm256_vm7, %v2667_v32, %v255_v41  ;;  %318 = vst.msk [vmem:[#allocation2 + $0x78] sm:$0xff] %vm301_vm8, %v2700_v16 }
  0x22   : > { %319 = vst.msk [vmem:[#allocation2 + $0x80] sm:$0xff] %vm301_vm8, %v2700_v16 }
  0x23   : > { %320 = vst.msk [vmem:[#allocation2 + $0x88] sm:$0x3] %vm304_vm9, %v2700_v16 }
  0x24   : > { %321 = vst.msk [vmem:[#allocation2 + $0x90] sm:$0xff] %vm301_vm8, %v2700_v16 }
  0x25   : > { %322 = vst.msk [vmem:[#allocation2 + $0x98] sm:$0xff] %vm301_vm8, %v2700_v16 }
  0x26   : > { %323 = vst.msk [vmem:[#allocation2 + $0xa0] sm:$0x3] %vm304_vm9, %v2700_v16 }
  0x27   : > { %324 = vst.msk [vmem:[#allocation2 + $0xa8] sm:$0xff] %vm301_vm8, %v2700_v16 }
  0x28   : > { %325 = vst.msk [vmem:[#allocation2 + $0xb0] sm:$0xff] %vm301_vm8, %v2700_v16 }
  0x29   : > { %326 = vst.msk [vmem:[#allocation2 + $0xb8] sm:$0x3] %vm304_vm9, %v2700_v16 }
  0x2a   : > { %327 = vst.msk [vmem:[#allocation2 + $0xc0] sm:$0xff] %vm301_vm8, %v2700_v16 }
  0x2b   : > { %328 = vst.msk [vmem:[#allocation2 + $0xc8] sm:$0xff] %vm301_vm8, %v2700_v16 }
  0x2c   : > { %329 = vst.msk [vmem:[#allocation2 + $0xd0] sm:$0x3] %vm304_vm9, %v2700_v16 }
  0x2d   : > { %330 = vst.msk [vmem:[#allocation2 + $0xd8] sm:$0xff] %vm301_vm8, %v2700_v16 }
  0x2e   : > { %331 = vst.msk [vmem:[#allocation2 + $0xe0] sm:$0xff] %vm301_vm8, %v2700_v16 }
  0x2f   : > { %332 = vst.msk [vmem:[#allocation2 + $0xe8] sm:$0x3] %vm304_vm9, %v2700_v16 }
  0x30   : > { %333 = vst.msk [vmem:[#allocation2 + $0xf0] sm:$0xff] %vm301_vm8, %v2700_v16 }
  0x31   : > { %334 = vst.msk [vmem:[#allocation2 + $0xf8] sm:$0xff] %vm301_vm8, %v2700_v16 }
  0x32   : > { %335 = vst.msk [vmem:[#allocation2 + $0x100] sm:$0x3] %vm304_vm9, %v2700_v16 }
  0x33   : > { %336 = vst.msk [vmem:[#allocation2 + $0x108] sm:$0xff] %vm301_vm8, %v2700_v16 }
  0x34   : > { %337 = vst.msk [vmem:[#allocation2 + $0x110] sm:$0xff] %vm301_vm8, %v2700_v16 }
  0x35   : > { %338 = vst.msk [vmem:[#allocation2 + $0x118] sm:$0x3] %vm304_vm9, %v2700_v16 }
  0x36   : > { %339 = vst.msk [vmem:[#allocation2 + $0x120] sm:$0xff] %vm301_vm8, %v2700_v16 }
  0x37   : > { %340 = vst.msk [vmem:[#allocation2 + $0x128] sm:$0xff] %vm301_vm8, %v2700_v16 }
  0x38   : > { %341 = vst.msk [vmem:[#allocation2 + $0x130] sm:$0x3] %vm304_vm9, %v2700_v16 }
  0x39   : > { %342 = vst.msk [vmem:[#allocation2 + $0x138] sm:$0xff] %vm301_vm8, %v2700_v16 }
  0x3a   : > { %343 = vst.msk [vmem:[#allocation2 + $0x140] sm:$0xff] %vm301_vm8, %v2700_v16 }
  0x3b   : > { %344 = vst.msk [vmem:[#allocation2 + $0x148] sm:$0x3] %vm304_vm9, %v2700_v16 }
  0x3c   : > { %345 = vst.msk [vmem:[#allocation2 + $0x150] sm:$0xff] %vm301_vm8, %v2700_v16 }
  0x3d   : > { %346 = vst.msk [vmem:[#allocation2 + $0x158] sm:$0xff] %vm301_vm8, %v2700_v16 }
  0x3e   : > { %347 = vst.msk [vmem:[#allocation2 + $0x160] sm:$0x3] %vm304_vm9, %v2700_v16 }
  0x3f   : > { %348 = vst.msk [vmem:[#allocation2 + $0x168] sm:$0xff] %vm301_vm8, %v2700_v16 }
  0x40   : > { %349 = vst.msk [vmem:[#allocation2 + $0x170] sm:$0xff] %vm301_vm8, %v2700_v16 }
  0x41   : > { %350 = vst.msk [vmem:[#allocation2 + $0x178] sm:$0x3] %vm304_vm9, %v2700_v16 }
  0x42   : > { %351 = vst.msk [vmem:[#allocation2 + $0x180] sm:$0xff] %vm301_vm8, %v2700_v16 }
  0x43   : > { %352 = vst.msk [vmem:[#allocation2 + $0x188] sm:$0xff] %vm301_vm8, %v2700_v16 }
  0x44   : > { %353 = vst.msk [vmem:[#allocation2 + $0x190] sm:$0x3] %vm304_vm9, %v2700_v16 }
  0x45   : > { %354 = vst.msk [vmem:[#allocation2 + $0x198] sm:$0xff] %vm301_vm8, %v2700_v16 }
  0x46   : > { %355 = vst.msk [vmem:[#allocation2 + $0x1a0] sm:$0xff] %vm301_vm8, %v2700_v16 }
  0x47   : > { %356 = vst.msk [vmem:[#allocation2 + $0x1a8] sm:$0x3] %vm304_vm9, %v2700_v16  ;;  %v373_v16 = vld [vmem:[%s2813_s6 + $0x80] sm:$0xff] }
  0x48   : > { %404 = vst.msk [vmem:[#allocation2 + $0xc1] sm:$0xff] %vm301_vm8, %v371_v26 }
  0x49   : > { %405 = vst.msk [vmem:[#allocation2 + $0xc9] sm:$0xff] %vm301_vm8, %v372_v28 }
  0x4a   : > { %412 = vst.msk [vmem:[#allocation2 + $0x121] sm:$0xff] %vm301_vm8, %v379_v29  ;;  %v370_v29 = vld [vmem:[%s2813_s6 + $0x68] sm:$0xff] }
  0x4b   : > { %413 = vst.msk [vmem:[#allocation2 + $0x129] sm:$0xff] %vm301_vm8, %v380_v31 }
  0x4c   : > { %398 = vst.msk [vmem:[#allocation2 + $0x79] sm:$0xff] %vm301_vm8, %v365_v33 }
  0x4d   : > { %399 = vst.msk [vmem:[#allocation2 + $0x81] sm:$0xff] %vm301_vm8, %v366_v34 }
  0x4e   : > { %406 = vst.msk [vmem:[#allocation2 + $0xd9] sm:$0xff] %vm301_vm8, %v373_v16 }
  0x4f   : > { %415 = vst.msk [vmem:[#allocation2 + $0x141] sm:$0xff] %vm301_vm8, %v382_v38  ;;  %v386_v38 = vld [vmem:[%s2813_s6 + $0xe8] sm:$0xff] }
  0x50   : > { %v3028_v41 = vld [vmem:[#allocation2 + $0xc8] sm:$0xff]  ;;  %403 = vst.msk [vmem:[#allocation2 + $0xb1] sm:$0xff] %vm301_vm8, %v370_v29 }
  0x51   : > { %v3034_v45 = vld [vmem:[#allocation2 + $0x120] sm:$0xff]  ;;  %419 = vst.msk [vmem:[#allocation2 + $0x171] sm:$0xff] %vm301_vm8, %v386_v38 }
  0x52   : > { %4257 = vst [vmem:[#allocation6_spill] sm:$0xff] %v3034_v45 }
  0x93   : > { %v243_v35 = vpop.xlane.xlu0 %242 }
  0x94   : > { %v244_v36 = vrot.slane %v243_v35, 4 }
  0x96   : > { %v245_v37 = vadd.f32 %v244_v36, %v243_v35  ;;  %v374_v36 = vld [vmem:[%s2813_s6 + $0x88] sm:$0xff] }
  0x97   : > { %407 = vst.msk [vmem:[#allocation2 + $0xe1] sm:$0xff] %vm301_vm8, %v374_v36  ;;  %v385_v36 = vld [vmem:[%s2813_s6 + $0xe0] sm:$0xff] }
  0x98   : > { %v246_v39 = vrot.slane %v245_v37, 2  ;;  %418 = vst.msk [vmem:[#allocation2 + $0x169] sm:$0xff] %vm301_vm8, %v385_v36 }
  0x9a   : > { %v247_v40 = vadd.f32 %v246_v39, %v245_v37  ;;  %v3024_v39 = vld [vmem:[#allocation2 + $0xc0] sm:$0xff] }
  0x9c   : > { %v248_v42 = vrot.slane %v247_v40, 1 }
  0x9e   : > { %v249_v43 = vadd.f32 %v248_v42, %v247_v40  ;;  %v357_v40 = vld [vmem:[%s2813_s6] sm:$0xff]  ;;  %v565_v42 = vrot.slane %v3024_v39, 1 }
  0x9f   : > { %390 = vst.msk [vmem:[#allocation2 + $0x19] sm:$0xff] %vm301_vm8, %v357_v40 }
  0xa0   : > { %2649 = vpush %v249_v43  ;;  %v358_v43 = vld [vmem:[%s2813_s6 + $0x8] sm:$0xff] }
  0xa1   : > { %2651 = vpush %v257_v44  ;;  %v566_v44 = vrot.slane %v3028_v41, 1 }
  0xa2   : > { %391 = vst.msk [vmem:[#allocation2 + $0x21] sm:$0xff] %vm301_vm8, %v358_v43 }
  0xa9   : > { %v3117_v31 = vld [vmem:[#allocation2 + $0x28] sm:$0x3] }
  0xaa   : > { %v533_v43 = vrot.slane %v3117_v31, 1 }
  0xd1   : > { %s2650_s7 = spop %2649 }
  0xd2   : > { %s2652_s8 = spop %2651 }
  0xd3   : > { %s259_s9 = smul.f32 %s2652_s8, %s2650_s7 }
  0xd5   : > { %p275_p4 = scmp.le.f32.partialorder %s259_s9, 0.01 }
  0xd7   : > { %s276_s10 = scalar_select %p275_p4, 1, 0 }
  0xd9   : > { %s277_s11 = scvt.s32.f32 %s276_s10 }
  0xdb   : > { %v2884_v48 = vstv %s277_s11  ;;  %s284_s12 = ssub.f32 1.0, %s277_s11 }
  0xdc   : > { %v279_v52 = vmul.f32 %v2340_v47, %v2884_v48  ;;  %v280_v56 = vmul.f32 %v2341_v49, %v2884_v48  ;;  %v281_v58 = vmul.f32 %v2342_v50, %v2884_v48  ;;  %v283_v13 = vmul.f32 %v2344_v60, %v2884_v48  ;;  %v367_v47 = vld [vmem:[%s2813_s6 + $0x50] sm:$0xff]  ;;  %v376_v60 = vld [vmem:[%s2813_s6 + $0x98] sm:$0xff] }
  0xdd   : > { %v2894_v51 = vstv %s284_s12  ;;  %v282_v35 = vmul.f32 %v2343_v8, %v2884_v48  ;;  %v3039_v48 = vld [vmem:[#allocation2 + $0x128] sm:$0xff]  ;;  %v585_v49 = vrot.slane %v3034_v45, 1  ;;  %v3042_v50 = vld [vmem:[#allocation2 + $0xd0] sm:$0x3]  ;;  %400 = vst.msk [vmem:[#allocation2 + $0x91] sm:$0xff] %vm301_vm8, %v367_v47 }
  0xde   : > { %v286_v53 = vmul.f32 %v2780_v17, %v2894_v51  ;;  %v287_v57 = vmul.f32 %v2783_v18, %v2894_v51  ;;  %v288_v59 = vmul.f32 %v2786_v19, %v2894_v51  ;;  %v290_v10 = vmul.f32 %v2796_v23, %v2894_v51  ;;  %4258 = vst [vmem:[#allocation7_spill] sm:$0xff] %v3039_v48  ;;  %v3283_v45 = vld [vmem:[#allocation2 + $0x170] sm:$0xff] }
  0xdf   : > { %v526_v17 = vrot.slane %v2924_v9, 1  ;;  %v2941_v18 = vsel %vm524_vm14, %v545_v63, %v546_v5  ;;  %v289_v32 = vmul.f32 %v2789_v20, %v2894_v51  ;;  %v381_v20 = vld [vmem:[%s2813_s6 + $0xc0] sm:$0xff]  ;;  %v368_v51 = vld [vmem:[%s2813_s6 + $0x58] sm:$0xff]  ;;  %v568_v63 = vrot.slane %v3042_v50, 1  ;;  %409 = vst.msk [vmem:[#allocation2 + $0xf9] sm:$0xff] %vm301_vm8, %v376_v60 }
  0xe0   : > { %v291_v61 = vadd.f32 %v286_v53, %v279_v52  ;;  %v292_v62 = vadd.f32 %v287_v57, %v280_v56  ;;  %v293_v6 = vadd.f32 %v288_v59, %v281_v58  ;;  %4255 = vst [vmem:[#allocation4_spill] sm:$0xff] %v2941_v18  ;;  %v295_v19 = vadd.f32 %v290_v10, %v283_v13  ;;  %v375_v56 = vld [vmem:[%s2813_s6 + $0x90] sm:$0xff]  ;;  %v3058_v58 = vld [vmem:[#allocation2 + $0x80] sm:$0xff]  ;;  %v3073_v10 = vld [vmem:[#allocation2 + $0x88] sm:$0x3] }
  0xe1   : > { %v294_v37 = vadd.f32 %v289_v32, %v282_v35  ;;  %414 = vst.msk [vmem:[#allocation2 + $0x139] sm:$0xff] %vm301_vm8, %v381_v20  ;;  %v3047_v52 = vsel %vm524_vm14, %v565_v42, %v566_v44  ;;  %v586_v53 = vrot.slane %v3039_v48, 1  ;;  %v3056_v57 = vld [vmem:[#allocation2 + $0x130] sm:$0x3]  ;;  %v378_v32 = vld [vmem:[%s2813_s6 + $0xa8] sm:$0xff] }
  0xe2   : > { %v296_v11 = vmul.f32 %v291_v61, %v2742_v0  ;;  %v297_v12 = vmul.f32 %v292_v62, %v2747_v1  ;;  %v298_v15 = vmul.f32 %v293_v6, %v2752_v2  ;;  %v525_v0 = vrot.slane %v2922_v7, 1  ;;  %v2949_v2 = vld [vmem:[#allocation2 + $0x70] sm:$0x3]  ;;  %4259 = vst [vmem:[#allocation8_spill] sm:$0xff] %v3047_v52 }
  0xe3   : > { %v548_v23 = vrot.slane %v2949_v2, 1  ;;  %v300_v24 = vmul.f32 %v295_v19, %v2762_v4  ;;  %v2990_v4 = vld [vmem:[#allocation2 + $0x10] sm:$0x3]  ;;  %v299_v46 = vmul.f32 %v294_v37, %v2757_v3  ;;  %v3050_v3 = vld [vmem:[#allocation2 + $0x78] sm:$0xff]  ;;  %4260 = vst [vmem:[#allocation9_spill] sm:$0xff] %v3056_v57  ;;  %v3064_v61 = vsel %vm524_vm14, %v585_v49, %v586_v53 }
  0xe4   : > { %v606_v14 = vrot.slane %v296_v11, 4  ;;  %v1259_v1 = vrot.slane %v297_v12, 4  ;;  %v1576_v21 = vrot.slane %v298_v15, 4  ;;  %v527_v22 = vsel %vm524_vm14, %v525_v0, %v526_v17  ;;  %4261 = vst [vmem:[#allocation10_spill] sm:$0xff] %v3064_v61  ;;  %v383_v6 = vld [vmem:[%s2813_s6 + $0xd0] sm:$0xff]  ;;  %v3094_v19 = vld [vmem:[#allocation2 + $0x18] sm:$0xff] }
  0xe5   : > { %v2980_v25 = vsel %vm524_vm14, %v546_v5, %v548_v23  ;;  %v528_v27 = vrot.slane %v2990_v4, 1  ;;  %v550_v59 = vrot.slane %v3050_v3, 1  ;;  %v1888_v62 = vrot.slane %v299_v46, 4  ;;  %401 = vst.msk [vmem:[#allocation2 + $0x99] sm:$0xff] %vm301_vm8, %v368_v51  ;;  %v3135_v37 = vld [vmem:[#allocation2 + $0x90] sm:$0xff] }
  0xe6   : > { %2345 = vmatpush.msk.msra.mxu0 %vm671_vm15, %v606_v14  ;;  %2646 = vmatpush.msk.msra.mxu1 %vm671_vm15, %v606_v14  ;;  %4256 = vst [vmem:[#allocation5_spill] sm:$0xff] %v2980_v25  ;;  %v551_v5 = vrot.slane %v3058_v58, 1  ;;  %v3089_v0 = vsel %vm524_vm14, %v566_v44, %v568_v63  ;;  %v530_v23 = vrot.slane %v3094_v19, 1  ;;  %v3154_v49 = vld [vmem:[#allocation2 + $0xe8] sm:$0x3] }
  0xe7   : > { %2647 = vmatpush.msk.msra.mxu2 %vm671_vm15, %v606_v14  ;;  %2648 = vmatpush.msk.msra.mxu3 %vm671_vm15, %v606_v14  ;;  %v529_v30 = vsel %vm524_vm14, %v526_v17, %v528_v27  ;;  %408 = vst.msk [vmem:[#allocation2 + $0xf1] sm:$0xff] %vm301_vm8, %v375_v56  ;;  %v359_v14 = vld [vmem:[%s2813_s6 + $0x10] sm:$0xff]  ;;  %v3091_v17 = vld [vmem:[#allocation2 + $0xd8] sm:$0xff]  ;;  %v573_v63 = vrot.slane %v3154_v49, 1 }
  0xe8   : > { %2354 = vmatmul.msk.f32.vlgmr.msra.gmra.mxu1 %vm301_vm8, %v2941_v18  ;;  %2477 = vmatpush.msk.msrb.mxu0 %vm671_vm15, %v298_v15  ;;  %v3080_v13 = vsel %vm524_vm14, %v550_v59, %v551_v5  ;;  %416 = vst.msk [vmem:[#allocation2 + $0x151] sm:$0xff] %vm301_vm8, %v383_v6  ;;  %v360_v15 = vld [vmem:[%s2813_s6 + $0x18] sm:$0xff]  ;;  %v3115_v8 = vld [vmem:[#allocation2 + $0x140] sm:$0xff]  ;;  %v570_v33 = vrot.slane %v3091_v17, 1  ;;  %v362_v6 = vld [vmem:[%s2813_s6 + $0x28] sm:$0xff] }
  0xe9   : > { %2411 = vmatpush.msk.msrb.mxu2 %vm671_vm15, %v297_v12  ;;  %2378 = vmatpush.msk.msrb.mxu1 %vm671_vm15, %v296_v11  ;;  %v384_v11 = vld [vmem:[%s2813_s6 + $0xd8] sm:$0xff]  ;;  %v588_v12 = vrot.slane %v3056_v57, 1  ;;  %4262 = vst [vmem:[#allocation11_spill] sm:$0xff] %v3080_v13  ;;  %v591_v42 = vrot.slane %v3115_v8, 1 }
  0xea   : > { %2444 = vmatpush.msk.msrb.mxu3 %vm671_vm15, %v1259_v1  ;;  %2346 = vmatmul.msk.f32.vlgmr.msra.gmra.mxu0 %vm301_vm8, %v527_v22  ;;  %4263 = vst [vmem:[#allocation12_spill] sm:$0xff] %v3089_v0  ;;  %v553_v1 = vrot.slane %v3073_v10, 1  ;;  %v3099_v22 = vld [vmem:[#allocation2 + $0x20] sm:$0xff]  ;;  %v3107_v27 = vld [vmem:[#allocation2 + $0x138] sm:$0xff] }
  0xeb   : > { %2510 = vmatpush.msk.msra.mxu1 %vm671_vm15, %v1576_v21  ;;  %2609 = vmatpush.msk.msra.mxu0 %vm671_vm15, %v300_v24  ;;  %417 = vst.msk [vmem:[#allocation2 + $0x159] sm:$0xff] %vm301_vm8, %v384_v11  ;;  %v3097_v21 = vld [vmem:[#allocation2 + $0xe0] sm:$0xff]  ;;  %v3105_v26 = vsel %vm524_vm14, %v586_v53, %v588_v12  ;;  %v531_v28 = vrot.slane %v3099_v22, 1  ;;  %v590_v40 = vrot.slane %v3107_v27, 1  ;;  %v3159_v53 = vld [vmem:[#allocation2 + $0x148] sm:$0x3] }
  0xec   : > { %2362 = vmatmul.msk.f32.vlgmr.msra.gmra.mxu2 %vm301_vm8, %v3047_v52  ;;  %2370 = vmatmul.msk.f32.vlgmr.msra.gmra.mxu3 %vm301_vm8, %v3064_v61  ;;  %392 = vst.msk [vmem:[#allocation2 + $0x31] sm:$0xff] %vm301_vm8, %v359_v14  ;;  %v369_v24 = vld [vmem:[%s2813_s6 + $0x60] sm:$0xff]  ;;  %v571_v34 = vrot.slane %v3097_v21, 1  ;;  %v3124_v35 = vsel %vm524_vm14, %v551_v5, %v553_v1  ;;  %v3137_v20 = vld [vmem:[#allocation2 + $0x98] sm:$0xff]  ;;  %v593_v12 = vrot.slane %v3159_v53, 1 }
  0xed   : > { %2543 = vmatpush.msk.msra.mxu2 %vm671_vm15, %v299_v46  ;;  %2576 = vmatpush.msk.msra.mxu3 %vm671_vm15, %v1888_v62  ;;  %4264 = vst [vmem:[#allocation13_spill] sm:$0xff] %v3105_v26  ;;  %v3127_v16 = vsel %vm524_vm14, %v530_v23, %v531_v28  ;;  %v555_v46 = vrot.slane %v3135_v37, 1  ;;  %v556_v47 = vrot.slane %v3137_v20, 1  ;;  %v3157_v51 = vsel %vm524_vm14, %v590_v40, %v591_v42  ;;  %v361_v62 = vld [vmem:[%s2813_s6 + $0x20] sm:$0xff] }
  0xee   : > { %4265 = vst [vmem:[#allocation14_spill] sm:$0xff] %v3107_v27  ;;  %v3149_v44 = vsel %vm524_vm14, %v570_v33, %v571_v34  ;;  %v3162_v56 = vsel %vm524_vm14, %v531_v28, %v533_v43  ;;  %v3181_v11 = vld [vmem:[#allocation2 + $0xa0] sm:$0x3]  ;;  %v3190_v1 = vsel %vm524_vm14, %v571_v34, %v573_v63  ;;  %v3195_v28 = vld [vmem:[#allocation2 + $0xf8] sm:$0xff]  ;;  %v3198_v29 = vsel %vm524_vm14, %v591_v42, %v593_v12 }
  0xef   : > { %393 = vst.msk [vmem:[#allocation2 + $0x39] sm:$0xff] %vm301_vm8, %v360_v15  ;;  %v3173_v5 = vsel %vm524_vm14, %v555_v46, %v556_v47  ;;  %v558_v23 = vrot.slane %v3181_v11, 1  ;;  %v576_v38 = vrot.slane %v3195_v28, 1 }
  0xf0   : > { %2355 = vmatmul.msk.f32.gmra.mxu1 %vm301_vm8, %v2980_v25  ;;  %4266 = vst [vmem:[#allocation15_spill] sm:$0xff] %v3115_v8 }
  0xf1   : > { %402 = vst.msk [vmem:[#allocation2 + $0xa9] sm:$0xff] %vm301_vm8, %v369_v24  ;;  %v3193_v24 = vld [vmem:[#allocation2 + $0xf0] sm:$0xff]  ;;  %v3214_v40 = vsel %vm524_vm14, %v556_v47, %v558_v23 }
  0xf2   : > { %2347 = vmatmul.msk.f32.gmra.mxu0 %vm301_vm8, %v529_v30  ;;  %v377_v30 = vld [vmem:[%s2813_s6 + $0xa0] sm:$0xff]  ;;  %4267 = vst [vmem:[#allocation16_spill] sm:$0xff] %v3124_v35  ;;  %v3207_v33 = vld [vmem:[#allocation2 + $0x158] sm:$0xff]  ;;  %v575_v36 = vrot.slane %v3193_v24, 1 }
  0xf3   : > { %410 = vst.msk [vmem:[#allocation2 + $0x109] sm:$0xff] %vm301_vm8, %v377_v30  ;;  %v3166_v59 = vld [vmem:[#allocation2 + $0x30] sm:$0xff] }
  0xf4   : > { %2363 = vmatmul.msk.f32.gmra.mxu2 %vm301_vm8, %v3089_v0  ;;  %2371 = vmatmul.msk.f32.gmra.mxu3 %vm301_vm8, %v3105_v26  ;;  %411 = vst.msk [vmem:[#allocation2 + $0x111] sm:$0xff] %vm301_vm8, %v378_v32  ;;  %v535_v14 = vrot.slane %v3166_v59, 1  ;;  %v3205_v32 = vld [vmem:[#allocation2 + $0x150] sm:$0xff]  ;;  %v3230_v47 = vsel %vm524_vm14, %v575_v36, %v576_v38  ;;  %v3281_v26 = vld [vmem:[#allocation2 + $0x168] sm:$0xff] }
  0xf5   : > { %4268 = vst [vmem:[#allocation17_spill] sm:$0xff] %v3149_v44  ;;  %v595_v46 = vrot.slane %v3205_v32, 1 }
  0xf6   : > { %4269 = vst [vmem:[#allocation18_spill] sm:$0xff] %v3157_v51  ;;  %v3168_v60 = vld [vmem:[#allocation2 + $0x38] sm:$0xff]  ;;  %v3209_v34 = vld [vmem:[#allocation2 + $0x40] sm:$0x3] }
  0xf7   : > { %4270 = vst [vmem:[#allocation19_spill] sm:$0xff] %v3159_v53  ;;  %v536_v15 = vrot.slane %v3168_v60, 1  ;;  %v538_v63 = vrot.slane %v3209_v34, 1 }
  0xf8   : > { %2356 = vmatmul.msk.f32.gmra.mxu1 %vm301_vm8, %v3080_v13  ;;  %4271 = vst [vmem:[#allocation20_spill] sm:$0xff] %v3173_v5  ;;  %v3220_v42 = vld [vmem:[#allocation2 + $0xa8] sm:$0xff]  ;;  %v3222_v43 = vld [vmem:[#allocation2 + $0xb0] sm:$0xff] }
  0xf9   : > { %394 = vst.msk [vmem:[#allocation2 + $0x49] sm:$0xff] %vm301_vm8, %v361_v62  ;;  %v3201_v30 = vsel %vm524_vm14, %v535_v14, %v536_v15  ;;  %v596_v62 = vrot.slane %v3207_v33, 1  ;;  %v561_v12 = vrot.slane %v3222_v43, 1  ;;  %v3234_v14 = vld [vmem:[#allocation2 + $0x100] sm:$0x3] }
  0xfa   : > { %2348 = vmatmul.msk.f32.gmra.mxu0 %vm301_vm8, %v3127_v16  ;;  %395 = vst.msk [vmem:[#allocation2 + $0x51] sm:$0xff] %vm301_vm8, %v362_v6  ;;  %v560_v6 = vrot.slane %v3220_v42, 1  ;;  %v578_v8 = vrot.slane %v3234_v14, 1 }
  0xfb   : > { %4272 = vst [vmem:[#allocation21_spill] sm:$0xff] %v3190_v1  ;;  %v3237_v23 = vsel %vm524_vm14, %v595_v46, %v596_v62 }
  0xfc   : > { %2364 = vmatmul.msk.f32.gmra.mxu2 %vm301_vm8, %v3149_v44  ;;  %2372 = vmatmul.msk.f32.gmra.mxu3 %vm301_vm8, %v3157_v51  ;;  %4273 = vst [vmem:[#allocation22_spill] sm:$0xff] %v3198_v29  ;;  %v3271_v51 = vld [vmem:[#allocation2 + $0x110] sm:$0xff] }
  0xfd   : > { %4274 = vst [vmem:[#allocation23_spill] sm:$0xff] %v3205_v32  ;;  %v3240_v32 = vsel %vm524_vm14, %v536_v15, %v538_v63  ;;  %v3258_v15 = vld [vmem:[#allocation2 + $0xb8] sm:$0x3]  ;;  %v581_v61 = vrot.slane %v3271_v51, 1 }
  0xfe   : > { %4275 = vst [vmem:[#allocation24_spill] sm:$0xff] %v3207_v33  ;;  %v3244_v33 = vld [vmem:[#allocation2 + $0x160] sm:$0x3]  ;;  %v563_v57 = vrot.slane %v3258_v15, 1 }
  0xff   : > { %4276 = vst [vmem:[#allocation25_spill] sm:$0xff] %v3214_v40  ;;  %v598_v46 = vrot.slane %v3244_v33, 1 }
 0x100   : > { %2357 = vmatmul.msk.f32.gmra.mxu1 %vm301_vm8, %v3124_v35  ;;  %4277 = vst [vmem:[#allocation26_spill] sm:$0xff] %v3234_v14  ;;  %v3246_v53 = vld [vmem:[#allocation2 + $0x48] sm:$0xff]  ;;  %v3290_v14 = vsel %vm524_vm14, %v561_v12, %v563_v57  ;;  %v3304_v57 = vld [vmem:[#allocation2 + $0x118] sm:$0x3] }
 0x101   : > { %4278 = vst [vmem:[#allocation27_spill] sm:$0xff] %v3237_v23  ;;  %v3248_v36 = vld [vmem:[#allocation2 + $0x50] sm:$0xff]  ;;  %v540_v63 = vrot.slane %v3246_v53, 1  ;;  %v3274_v48 = vsel %vm524_vm14, %v596_v62, %v598_v46  ;;  %v600_v62 = vrot.slane %v3281_v26, 1  ;;  %v601_v46 = vrot.slane %v3283_v45, 1 }
 0x102   : > { %2349 = vmatmul.msk.f32.gmra.mxu0 %vm301_vm8, %v3162_v56  ;;  %4279 = vst [vmem:[#allocation28_spill] sm:$0xff] %v3244_v33  ;;  %v541_v27 = vrot.slane %v3248_v36, 1 }
 0x103   : > { %4281 = vst [vmem:[#allocation30_spill] sm:$0xff] %v3271_v51 }
 0x104   : > { %2365 = vmatmul.msk.f32.gmra.mxu2 %vm301_vm8, %v3190_v1  ;;  %2373 = vmatmul.msk.f32.gmra.mxu3 %vm301_vm8, %v3198_v29  ;;  %v3252_v29 = vsel %vm524_vm14, %v560_v6, %v561_v12  ;;  %v3266_v6 = vsel %vm524_vm14, %v576_v38, %v578_v8  ;;  %4282 = vst [vmem:[#allocation31_spill] sm:$0xff] %v3274_v48  ;;  %v3285_v8 = vld [vmem:[#allocation2 + $0x58] sm:$0x3] }
 0x105   : > { %4280 = vst [vmem:[#allocation29_spill] sm:$0xff] %v3252_v29  ;;  %v3277_v33 = vsel %vm524_vm14, %v540_v63, %v541_v27  ;;  %v543_v63 = vrot.slane %v3285_v8, 1  ;;  %v3307_v12 = vsel %vm524_vm14, %v600_v62, %v601_v46 }
 0x106   : > { %4283 = vst [vmem:[#allocation32_spill] sm:$0xff] %v3281_v26  ;;  %v583_v26 = vrot.slane %v3304_v57, 1 }
 0x107   : > { %4284 = vst [vmem:[#allocation33_spill] sm:$0xff] %v3283_v45  ;;  %v3314_v45 = vld [vmem:[#allocation2 + $0x178] sm:$0x3] }
 0x108   : > { %2358 = vmatmul.msk.f32.gmra.mxu1 %vm301_vm8, %v3173_v5  ;;  %4285 = vst [vmem:[#allocation34_spill] sm:$0xff] %v3290_v14 }
 0x109   : > { %4286 = vst [vmem:[#allocation35_spill] sm:$0xff] %v3307_v12 }
 0x10a   : > { %2350 = vmatmul.msk.f32.gmra.mxu0 %vm301_vm8, %v3201_v30 }
 0x10c   : > { %2366 = vmatmul.msk.f32.gmra.mxu2 %vm301_vm8, %v3230_v47  ;;  %2374 = vmatmul.msk.f32.gmra.mxu3 %vm301_vm8, %v3237_v23  ;;  %v3269_v23 = vld [vmem:[#allocation2 + $0x108] sm:$0xff] }
 0x10d   : > { %v580_v38 = vrot.slane %v3269_v23, 1 }
 0x10f   : > { %v3302_v51 = vsel %vm524_vm14, %v580_v38, %v581_v61  ;;  %v603_v38 = vrot.slane %v3314_v45, 1 }
 0x110   : > { %2359 = vmatmul.msk.f32.gmra.mxu1 %vm301_vm8, %v3214_v40 }
 0x111   : > { %v3328_v62 = vsel %vm524_vm14, %v601_v46, %v603_v38  ;;  %v978_v46 = vrot.slane %v3168_v60, 2 }
 0x112   : > { %2351 = vmatmul.msk.f32.gmra.mxu0 %vm301_vm8, %v3240_v32  ;;  %4287 = vst [vmem:[#allocation36_spill] sm:$0xff] %v3328_v62 }
 0x114   : > { %2367 = vmatmul.msk.f32.gmra.mxu2 %vm301_vm8, %v3266_v6  ;;  %2375 = vmatmul.msk.f32.gmra.mxu3 %vm301_vm8, %v3274_v48  ;;  %v3310_v48 = vsel %vm524_vm14, %v541_v27, %v543_v63  ;;  %v3325_v27 = vsel %vm524_vm14, %v581_v61, %v583_v26  ;;  %v967_v63 = vrot.slane %v2922_v7, 2  ;;  %v970_v26 = vrot.slane %v2990_v4, 2 }
 0x118   : > { %2360 = vmatmul.msk.f32.gmra.mxu1 %vm301_vm8, %v3252_v29 }
 0x11a   : > { %2352 = vmatmul.msk.f32.gmra.mxu0 %vm301_vm8, %v3277_v33 }
 0x11c   : > { %2368 = vmatmul.msk.f32.gmra.mxu2 %vm301_vm8, %v3302_v51  ;;  %2376 = vmatmul.msk.f32.gmra.mxu3 %vm301_vm8, %v3307_v12  ;;  %v968_v12 = vrot.slane %v2924_v9, 2 }
 0x11e   : > { %v969_v61 = vsel %vm966_vm1, %v967_v63, %v968_v12  ;;  %v982_v63 = vrot.slane %v3246_v53, 2 }
 0x120   : > { %2361 = vmatmul.msk.f32.gmra.mxu1 %vm301_vm8, %v3290_v14 }
 0x122   : > { %2353 = vmatmul.msk.f32.gmra.mxu0 %vm301_vm8, %v3310_v48 }
 0x124   : > { %2369 = vmatmul.msk.f32.gmra.mxu2 %vm301_vm8, %v3325_v27  ;;  %2377 = vmatmul.msk.f32.gmra.mxu3 %vm301_vm8, %v3328_v62 }
 0x128   : > { %2379 = vmatmul.msk.f32.vlgmr.msrb.gmra.mxu1 %vm301_vm8, %v2922_v7  ;;  %v971_v7 = vsel %vm966_vm1, %v968_v12, %v970_v26  ;;  %v980_v12 = vrot.slane %v3209_v34, 2 }
 0x12a   : > { %2478 = vmatmul.msk.f32.vlgmr.msrb.gmra.mxu0 %vm301_vm8, %v3127_v16  ;;  %v973_v16 = vrot.slane %v3099_v22, 2  ;;  %v3397_v38 = vsel %vm966_vm1, %v978_v46, %v980_v12 }
 0x12c   : > { %2412 = vmatmul.msk.f32.vlgmr.msrb.gmra.mxu2 %vm301_vm8, %v969_v61  ;;  %2445 = vmatmul.msk.f32.vlgmr.msrb.gmra.mxu3 %vm301_vm8, %v3094_v19  ;;  %v983_v61 = vrot.slane %v3248_v36, 2 }
 0x12e   : > { %v3410_v34 = vsel %vm966_vm1, %v982_v63, %v983_v61 }
 0x130   : > { %2380 = vmatmul.msk.f32.gmra.mxu1 %vm301_vm8, %v2924_v9  ;;  %v972_v9 = vrot.slane %v3094_v19, 2 }
 0x132   : > { %2479 = vmatmul.msk.f32.gmra.mxu0 %vm301_vm8, %v3162_v56  ;;  %v3360_v4 = vsel %vm966_vm1, %v972_v9, %v973_v16  ;;  %v975_v56 = vrot.slane %v3117_v31, 2 }
 0x134   : > { %2413 = vmatmul.msk.f32.gmra.mxu2 %vm301_vm8, %v971_v7  ;;  %2446 = vmatmul.msk.f32.gmra.mxu3 %vm301_vm8, %v3099_v22  ;;  %v985_v7 = vrot.slane %v3285_v8, 2  ;;  %v987_v8 = vrot.slane %v2901_v54, 2 }
 0x138   : > { %2381 = vmatmul.msk.f32.gmra.mxu1 %vm301_vm8, %v3094_v19  ;;  %v3372_v19 = vsel %vm966_vm1, %v973_v16, %v975_v56  ;;  %v3426_v16 = vsel %vm966_vm1, %v983_v61, %v985_v7 }
 0x13a   : > { %2480 = vmatmul.msk.f32.gmra.mxu0 %vm301_vm8, %v3201_v30 }
 0x13c   : > { %2414 = vmatmul.msk.f32.gmra.mxu2 %vm301_vm8, %v3360_v4  ;;  %2447 = vmatmul.msk.f32.gmra.mxu3 %vm301_vm8, %v3166_v59 }
 0x140   : > { %2382 = vmatmul.msk.f32.gmra.mxu1 %vm301_vm8, %v3099_v22  ;;  %v977_v22 = vrot.slane %v3166_v59, 2 }
 0x142   : > { %2481 = vmatmul.msk.f32.gmra.mxu0 %vm301_vm8, %v3240_v32  ;;  %v3385_v31 = vsel %vm966_vm1, %v977_v22, %v978_v46  ;;  %v988_v22 = vrot.slane %v2903_v55, 2 }
 0x144   : > { %2415 = vmatmul.msk.f32.gmra.mxu2 %vm301_vm8, %v3372_v19  ;;  %2448 = vmatmul.msk.f32.gmra.mxu3 %vm301_vm8, %v3168_v60  ;;  %v3441_v46 = vsel %vm966_vm1, %v987_v8, %v988_v22 }
 0x148   : > { %2383 = vmatmul.msk.f32.gmra.mxu1 %vm301_vm8, %v3166_v59 }
 0x14a   : > { %2482 = vmatmul.msk.f32.gmra.mxu0 %vm301_vm8, %v3277_v33 }
 0x14c   : > { %2416 = vmatmul.msk.f32.gmra.mxu2 %vm301_vm8, %v3385_v31  ;;  %2449 = vmatmul.msk.f32.gmra.mxu3 %vm301_vm8, %v3246_v53 }
 0x150   : > { %2384 = vmatmul.msk.f32.gmra.mxu1 %vm301_vm8, %v3168_v60 }
 0x152   : > { %2483 = vmatmul.msk.f32.gmra.mxu0 %vm301_vm8, %v3310_v48 }
 0x154   : > { %2417 = vmatmul.msk.f32.gmra.mxu2 %vm301_vm8, %v3397_v38  ;;  %2450 = vmatmul.msk.f32.gmra.mxu3 %vm301_vm8, %v3248_v36 }
 0x158   : > { %2385 = vmatmul.msk.f32.gmra.mxu1 %vm301_vm8, %v3246_v53 }
 0x15a   : > { %2484 = vmatmul.msk.f32.gmra.mxu0 %vm301_vm8, %v2941_v18 }
 0x15c   : > { %2418 = vmatmul.msk.f32.gmra.mxu2 %vm301_vm8, %v3410_v34  ;;  %2451 = vmatmul.msk.f32.gmra.mxu3 %vm301_vm8, %v2901_v54 }
 0x160   : > { %2386 = vmatmul.msk.f32.gmra.mxu1 %vm301_vm8, %v3248_v36 }
 0x162   : > { %2485 = vmatmul.msk.f32.gmra.mxu0 %vm301_vm8, %v2980_v25  ;;  %v995_v25 = vrot.slane %v3073_v10, 2  ;;  %v997_v10 = vrot.slane %v3135_v37, 2 }
 0x164   : > { %2419 = vmatmul.msk.f32.gmra.mxu2 %vm301_vm8, %v3426_v16  ;;  %2452 = vmatmul.msk.f32.gmra.mxu3 %vm301_vm8, %v2903_v55 }
 0x165   : > { %v3412_v26 = vpop.f32.mrf.mxu1 }
 0x167   : > { %v3421_v9 = vpop.f32.mrf.mxu0 }
 0x168   : > { %2387 = vmatmul.msk.f32.gmra.mxu1 %vm301_vm8, %v2901_v54  ;;  %v990_v54 = vrot.slane %v2949_v2, 2  ;;  %v992_v2 = vrot.slane %v3050_v3, 2 }
 0x16a   : > { %2486 = vmatmul.msk.f32.gmra.mxu0 %vm301_vm8, %v3080_v13  ;;  %v3461_v7 = vsel %vm966_vm1, %v988_v22, %v990_v54  ;;  %v993_v13 = vrot.slane %v3058_v58, 2 }
 0x16b   : > { %4289 = vst [vmem:[#allocation38_spill] sm:$0xff] %v3461_v7 }
 0x16c   : > { %2420 = vmatmul.msk.f32.gmra.mxu2 %vm301_vm8, %v3441_v46  ;;  %2453 = vmatmul.msk.f32.gmra.mxu3 %vm301_vm8, %v3050_v3  ;;  %v3482_v54 = vsel %vm966_vm1, %v992_v2, %v993_v13 }
 0x16d   : > { %v3428_v56 = vpop.f32.mrf.mxu1  ;;  %4291 = vst [vmem:[#allocation40_spill] sm:$0xff] %v3482_v54 }
 0x16f   : > { %v3443_v12 = vpop.f32.mrf.mxu0  ;;  %v3454_v61 = vpop.f32.mrf.mxu2 }
 0x170   : > { %2388 = vmatmul.msk.f32.gmra.mxu1 %vm301_vm8, %v2903_v55  ;;  %v3458_v55 = vpop.f32.mrf.mxu3 }
 0x171   : > { %4288 = vst [vmem:[#allocation37_spill] sm:$0xff] %v3458_v55 }
 0x172   : > { %2487 = vmatmul.msk.f32.gmra.mxu0 %vm301_vm8, %v3124_v35 }
 0x174   : > { %2421 = vmatmul.msk.f32.gmra.mxu2 %vm301_vm8, %v3461_v7  ;;  %2454 = vmatmul.msk.f32.gmra.mxu3 %vm301_vm8, %v3058_v58 }
 0x175   : > { %v3448_v63 = vpop.f32.mrf.mxu1 }
 0x177   : > { %v3463_v8 = vpop.f32.mrf.mxu0  ;;  %v3475_v55 = vpop.f32.mrf.mxu2 }
 0x178   : > { %2389 = vmatmul.msk.f32.gmra.mxu1 %vm301_vm8, %v3050_v3  ;;  %v3479_v22 = vpop.f32.mrf.mxu3 }
 0x179   : > { %4290 = vst [vmem:[#allocation39_spill] sm:$0xff] %v3479_v22  ;;  %v3502_v22 = vsel %vm966_vm1, %v993_v13, %v995_v25 }
 0x17a   : > { %2488 = vmatmul.msk.f32.gmra.mxu0 %vm301_vm8, %v3173_v5  ;;  %4293 = vst [vmem:[#allocation42_spill] sm:$0xff] %v3502_v22 }
 0x17c   : > { %2422 = vmatmul.msk.f32.gmra.mxu2 %vm301_vm8, %v3482_v54  ;;  %2455 = vmatmul.msk.f32.gmra.mxu3 %vm301_vm8, %v3135_v37  ;;  %v998_v54 = vrot.slane %v3137_v20, 2 }
 0x17d   : > { %v3469_v35 = vpop.f32.mrf.mxu1 }
 0x17e   : > { %v3523_v13 = vsel %vm966_vm1, %v997_v10, %v998_v54 }
 0x17f   : > { %v3484_v3 = vpop.f32.mrf.mxu0  ;;  %4295 = vst [vmem:[#allocation44_spill] sm:$0xff] %v3523_v13 }
 0x180   : > { %2390 = vmatmul.msk.f32.gmra.mxu1 %vm301_vm8, %v3058_v58  ;;  %v3495_v58 = vpop.f32.mrf.mxu2  ;;  %v3499_v2 = vpop.f32.mrf.mxu3 }
 0x181   : > { %4292 = vst [vmem:[#allocation41_spill] sm:$0xff] %v3499_v2 }
 0x182   : > { %2489 = vmatmul.msk.f32.gmra.mxu0 %vm301_vm8, %v3214_v40 }
 0x184   : > { %2423 = vmatmul.msk.f32.gmra.mxu2 %vm301_vm8, %v3502_v22  ;;  %2456 = vmatmul.msk.f32.gmra.mxu3 %vm301_vm8, %v3137_v20  ;;  %v1000_v22 = vrot.slane %v3181_v11, 2  ;;  %v1002_v11 = vrot.slane %v3220_v42, 2 }
 0x185   : > { %v3489_v7 = vpop.f32.mrf.mxu1 }
 0x187   : > { %v3504_v5 = vpop.f32.mrf.mxu0 }
 0x188   : > { %2391 = vmatmul.msk.f32.gmra.mxu1 %vm301_vm8, %v3135_v37  ;;  %v3516_v2 = vpop.f32.mrf.mxu2  ;;  %v3520_v25 = vpop.f32.mrf.mxu3 }
 0x189   : > { %4294 = vst [vmem:[#allocation43_spill] sm:$0xff] %v3520_v25  ;;  %v3543_v25 = vsel %vm966_vm1, %v998_v54, %v1000_v22 }
 0x18a   : > { %2490 = vmatmul.msk.f32.gmra.mxu0 %vm301_vm8, %v3252_v29  ;;  %4298 = vst [vmem:[#allocation47_spill] sm:$0xff] %v3543_v25 }
 0x18c   : > { %2424 = vmatmul.msk.f32.gmra.mxu2 %vm301_vm8, %v3523_v13  ;;  %2457 = vmatmul.msk.f32.gmra.mxu3 %vm301_vm8, %v3220_v42  ;;  %v1003_v13 = vrot.slane %v3222_v43, 2 }
 0x18d   : > { %v3510_v40 = vpop.f32.mrf.mxu1 }
 0x18e   : > { %v3564_v54 = vsel %vm966_vm1, %v1002_v11, %v1003_v13 }
 0x18f   : > { %v3525_v37 = vpop.f32.mrf.mxu0  ;;  %4301 = vst [vmem:[#allocation50_spill] sm:$0xff] %v3564_v54 }
 0x190   : > { %2392 = vmatmul.msk.f32.gmra.mxu1 %vm301_vm8, %v3137_v20  ;;  %v3536_v20 = vpop.f32.mrf.mxu2  ;;  %v3540_v10 = vpop.f32.mrf.mxu3 }
 0x191   : > { %4296 = vst [vmem:[#allocation45_spill] sm:$0xff] %v3536_v20 }
 0x192   : > { %2491 = vmatmul.msk.f32.gmra.mxu0 %vm301_vm8, %v3290_v14  ;;  %4297 = vst [vmem:[#allocation46_spill] sm:$0xff] %v3540_v10 }
 0x194   : > { %2425 = vmatmul.msk.f32.gmra.mxu2 %vm301_vm8, %v3543_v25  ;;  %2458 = vmatmul.msk.f32.gmra.mxu3 %vm301_vm8, %v3222_v43  ;;  %v1005_v25 = vrot.slane %v3258_v15, 2  ;;  %v1007_v15 = vrot.slane %v3024_v39, 2 }
 0x195   : > { %v3530_v18 = vpop.f32.mrf.mxu1 }
 0x197   : > { %v3545_v29 = vpop.f32.mrf.mxu0 }
 0x198   : > { %2393 = vmatmul.msk.f32.gmra.mxu1 %vm301_vm8, %v3220_v42  ;;  %v3557_v10 = vpop.f32.mrf.mxu2  ;;  %v3561_v22 = vpop.f32.mrf.mxu3 }
 0x199   : > { %4299 = vst [vmem:[#allocation48_spill] sm:$0xff] %v3557_v10 }
 0x19a   : > { %2492 = vmatmul.msk.f32.gmra.mxu0 %vm301_vm8, %v3047_v52  ;;  %4300 = vst [vmem:[#allocation49_spill] sm:$0xff] %v3561_v22  ;;  %v3582_v22 = vsel %vm966_vm1, %v1003_v13, %v1005_v25 }
 0x19b   : > { %4304 = vst [vmem:[#allocation53_spill] sm:$0xff] %v3582_v22 }
 0x19c   : > { %2426 = vmatmul.msk.f32.gmra.mxu2 %vm301_vm8, %v3564_v54  ;;  %2459 = vmatmul.msk.f32.gmra.mxu3 %vm301_vm8, %v3024_v39  ;;  %v1008_v54 = vrot.slane %v3028_v41, 2 }
 0x19d   : > { %v3551_v14 = vpop.f32.mrf.mxu1 }
 0x19e   : > { %v3599_v13 = vsel %vm966_vm1, %v1007_v15, %v1008_v54 }
 0x19f   : > { %v3566_v42 = vpop.f32.mrf.mxu0  ;;  %4307 = vst [vmem:[#allocation56_spill] sm:$0xff] %v3599_v13 }
 0x1a0   : > { %2394 = vmatmul.msk.f32.gmra.mxu1 %vm301_vm8, %v3222_v43  ;;  %v3575_v43 = vpop.f32.mrf.mxu2  ;;  %v3579_v11 = vpop.f32.mrf.mxu3 }
 0x1a1   : > { %4302 = vst [vmem:[#allocation51_spill] sm:$0xff] %v3575_v43 }
 0x1a2   : > { %2493 = vmatmul.msk.f32.gmra.mxu0 %vm301_vm8, %v3089_v0  ;;  %4303 = vst [vmem:[#allocation52_spill] sm:$0xff] %v3579_v11  ;;  %v1010_v11 = vrot.slane %v3042_v50, 2 }
 0x1a4   : > { %2427 = vmatmul.msk.f32.gmra.mxu2 %vm301_vm8, %v3582_v22  ;;  %2460 = vmatmul.msk.f32.gmra.mxu3 %vm301_vm8, %v3028_v41 }
 0x1a5   : > { %v870_v20 = vpop.f32.mrf.mxu1 }
 0x1a6   : > { %v871_v43 = vadd.f32 %v870_v20, %v3421_v9  ;;  %v1012_v9 = vrot.slane %v3091_v17, 2  ;;  %v1013_v20 = vrot.slane %v3097_v21, 2 }
 0x1a7   : > { %v1443_v52 = vpop.f32.mrf.mxu0 }
 0x1a8   : > { %2395 = vmatmul.msk.f32.gmra.mxu1 %vm301_vm8, %v3024_v39  ;;  %v3592_v0 = vpop.f32.mrf.mxu2  ;;  %v3596_v25 = vpop.f32.mrf.mxu3 }
 0x1a9   : > { %4305 = vst [vmem:[#allocation54_spill] sm:$0xff] %v3592_v0 }
 0x1aa   : > { %2494 = vmatmul.msk.f32.gmra.mxu0 %vm301_vm8, %v3149_v44  ;;  %4306 = vst [vmem:[#allocation55_spill] sm:$0xff] %v3596_v25  ;;  %v3612_v44 = vsel %vm966_vm1, %v1008_v54, %v1010_v11 }
 0x1ac   : > { %2428 = vmatmul.msk.f32.gmra.mxu2 %vm301_vm8, %v3599_v13  ;;  %2461 = vmatmul.msk.f32.gmra.mxu3 %vm301_vm8, %v3091_v17 }
 0x1ad   : > { %v873_v10 = vpop.f32.mrf.mxu1 }
 0x1af   : > { %v1446_v39 = vpop.f32.mrf.mxu0 }
 0x1b0   : > { %2396 = vmatmul.msk.f32.gmra.mxu1 %vm301_vm8, %v3028_v41  ;;  %v1131_v41 = vpop.f32.mrf.mxu2  ;;  %v1285_v15 = vpop.f32.mrf.mxu3 }
 0x1b1   : > { %v1227_v25 = vadd.f32 %v1131_v41, %v871_v43  ;;  %v874_v43 = vadd.f32 %v873_v10, %v3443_v12  ;;  %v1015_v12 = vrot.slane %v3154_v49, 2 }
 0x1b2   : > { %2495 = vmatmul.msk.f32.gmra.mxu0 %vm301_vm8, %v3190_v1 }
 0x1b3   : > { %v1381_v13 = vadd.f32 %v1285_v15, %v1227_v25  ;;  %v3628_v25 = vsel %vm966_vm1, %v1012_v9, %v1013_v20 }
 0x1b4   : > { %2429 = vmatmul.msk.f32.gmra.mxu2 %vm301_vm8, %v3612_v44  ;;  %2462 = vmatmul.msk.f32.gmra.mxu3 %vm301_vm8, %v3097_v21 }
 0x1b5   : > { %v876_v22 = vpop.f32.mrf.mxu1  ;;  %v3614_v0 = vadd.f32 %v1443_v52, %v1381_v13 }
 0x1b6   : > { %v877_v15 = vadd.f32 %v876_v22, %v3463_v8  ;;  %v1017_v8 = vrot.slane %v3193_v24, 2  ;;  %v1018_v22 = vrot.slane %v3195_v28, 2 }
 0x1b7   : > { %v1449_v50 = vpop.f32.mrf.mxu0 }
 0x1b8   : > { %2397 = vmatmul.msk.f32.gmra.mxu1 %vm301_vm8, %v3091_v17  ;;  %v1134_v54 = vpop.f32.mrf.mxu2  ;;  %v1288_v52 = vpop.f32.mrf.mxu3 }
 0x1b9   : > { %v1228_v11 = vadd.f32 %v1134_v54, %v874_v43  ;;  %v3643_v43 = vsel %vm966_vm1, %v1013_v20, %v1015_v12 }
 0x1ba   : > { %2496 = vmatmul.msk.f32.gmra.mxu0 %vm301_vm8, %v3230_v47 }
 0x1bb   : > { %v1382_v17 = vadd.f32 %v1288_v52, %v1228_v11 }
 0x1bc   : > { %2430 = vmatmul.msk.f32.gmra.mxu2 %vm301_vm8, %v3628_v25  ;;  %2463 = vmatmul.msk.f32.gmra.mxu3 %vm301_vm8, %v3193_v24 }
 0x1bd   : > { %v879_v1 = vpop.f32.mrf.mxu1  ;;  %v3630_v41 = vadd.f32 %v1446_v39, %v1382_v17 }
 0x1be   : > { %v880_v17 = vadd.f32 %v879_v1, %v3484_v3  ;;  %v4308_v1 = vld [vmem:[#allocation26_spill] sm:$0xff] }
 0x1bf   : > { %v1452_v13 = vpop.f32.mrf.mxu0  ;;  %v1020_v3 = vrot.slane %v4308_v1, 2 }
 0x1c0   : > { %2398 = vmatmul.msk.f32.gmra.mxu1 %vm301_vm8, %v3097_v21  ;;  %v1137_v21 = vpop.f32.mrf.mxu2  ;;  %v1291_v39 = vpop.f32.mrf.mxu3 }
 0x1c1   : > { %v1229_v9 = vadd.f32 %v1137_v21, %v877_v15  ;;  %v3659_v15 = vsel %vm966_vm1, %v1017_v8, %v1018_v22 }
 0x1c2   : > { %2497 = vmatmul.msk.f32.gmra.mxu0 %vm301_vm8, %v3266_v6 }
 0x1c3   : > { %v1383_v54 = vadd.f32 %v1291_v39, %v1229_v9 }
 0x1c4   : > { %2431 = vmatmul.msk.f32.gmra.mxu2 %vm301_vm8, %v3643_v43  ;;  %2464 = vmatmul.msk.f32.gmra.mxu3 %vm301_vm8, %v3195_v28 }
 0x1c5   : > { %v882_v10 = vpop.f32.mrf.mxu1  ;;  %v3645_v11 = vadd.f32 %v1449_v50, %v1383_v54 }
 0x1c6   : > { %v883_v54 = vadd.f32 %v882_v10, %v3504_v5  ;;  %v1022_v5 = vrot.slane %v3269_v23, 2  ;;  %v4309_v10 = vld [vmem:[#allocation30_spill] sm:$0xff] }
 0x1c7   : > { %v1455_v49 = vpop.f32.mrf.mxu0 }
 0x1c8   : > { %2399 = vmatmul.msk.f32.gmra.mxu1 %vm301_vm8, %v3193_v24  ;;  %v1140_v20 = vpop.f32.mrf.mxu2  ;;  %v1294_v50 = vpop.f32.mrf.mxu3 }
 0x1c9   : > { %v1230_v12 = vadd.f32 %v1140_v20, %v880_v17  ;;  %v3674_v17 = vsel %vm966_vm1, %v1018_v22, %v1020_v3 }
 0x1ca   : > { %2498 = vmatmul.msk.f32.gmra.mxu0 %vm301_vm8, %v3302_v51 }
 0x1cb   : > { %v1384_v24 = vadd.f32 %v1294_v50, %v1230_v12 }
 0x1cc   : > { %2432 = vmatmul.msk.f32.gmra.mxu2 %vm301_vm8, %v3659_v15  ;;  %2465 = vmatmul.msk.f32.gmra.mxu3 %vm301_vm8, %v3269_v23 }
 0x1cd   : > { %v885_v52 = vpop.f32.mrf.mxu1  ;;  %v3661_v9 = vadd.f32 %v1452_v13, %v1384_v24  ;;  %v1023_v24 = vrot.slane %v4309_v10, 2 }
 0x1cf   : > { %v1458_v21 = vpop.f32.mrf.mxu0 }
 0x1d0   : > { %2400 = vmatmul.msk.f32.gmra.mxu1 %vm301_vm8, %v3195_v28  ;;  %v1143_v28 = vpop.f32.mrf.mxu2  ;;  %v1297_v13 = vpop.f32.mrf.mxu3 }
 0x1d1   : > { %v1231_v8 = vadd.f32 %v1143_v28, %v883_v54  ;;  %v886_v54 = vadd.f32 %v885_v52, %v3525_v37  ;;  %v4310_v28 = vld [vmem:[#allocation10_spill] sm:$0xff]  ;;  %v1025_v37 = vrot.slane %v3304_v57, 2 }
 0x1d2   : > { %2499 = vmatmul.msk.f32.gmra.mxu0 %vm301_vm8, %v3325_v27 }
 0x1d3   : > { %v1385_v20 = vadd.f32 %v1297_v13, %v1231_v8  ;;  %v3690_v8 = vsel %vm966_vm1, %v1022_v5, %v1023_v24 }
 0x1d4   : > { %2433 = vmatmul.msk.f32.gmra.mxu2 %vm301_vm8, %v3674_v17  ;;  %2466 = vmatmul.msk.f32.gmra.mxu3 %vm301_vm8, %v4309_v10 }
 0x1d5   : > { %v888_v39 = vpop.f32.mrf.mxu1  ;;  %v3676_v50 = vadd.f32 %v1455_v49, %v1385_v20 }
 0x1d7   : > { %v1461_v12 = vpop.f32.mrf.mxu0 }
 0x1d8   : > { %2401 = vmatmul.msk.f32.gmra.mxu1 %vm301_vm8, %v3269_v23  ;;  %v1146_v22 = vpop.f32.mrf.mxu2  ;;  %v1300_v49 = vpop.f32.mrf.mxu3 }
 0x1d9   : > { %v1232_v3 = vadd.f32 %v1146_v22, %v886_v54  ;;  %v4312_v54 = vld [vmem:[#allocation6_spill] sm:$0xff] }
 0x1da   : > { %2500 = vmatmul.msk.f32.gmra.mxu0 %vm301_vm8, %v4310_v28  ;;  %v889_v28 = vadd.f32 %v888_v39, %v3545_v29  ;;  %v1027_v29 = vrot.slane %v4312_v54, 2  ;;  %v4315_v39 = vld [vmem:[#allocation7_spill] sm:$0xff] }
 0x1db   : > { %v1386_v23 = vadd.f32 %v1300_v49, %v1232_v3  ;;  %v3705_v3 = vsel %vm966_vm1, %v1023_v24, %v1025_v37 }
 0x1dc   : > { %2434 = vmatmul.msk.f32.gmra.mxu2 %vm301_vm8, %v3690_v8  ;;  %2467 = vmatmul.msk.f32.gmra.mxu3 %vm301_vm8, %v4312_v54 }
 0x1dd   : > { %v891_v1 = vpop.f32.mrf.mxu1  ;;  %v3692_v20 = vadd.f32 %v1458_v21, %v1386_v23 }
 0x1df   : > { %v1464_v13 = vpop.f32.mrf.mxu0  ;;  %4311 = vst [vmem:[#allocation26_spill] sm:$0xff] %v3692_v20 }
 0x1e0   : > { %2402 = vmatmul.msk.f32.gmra.mxu1 %vm301_vm8, %v4309_v10  ;;  %v4313_v10 = vld [vmem:[#allocation13_spill] sm:$0xff]  ;;  %v1149_v5 = vpop.f32.mrf.mxu2  ;;  %v1303_v21 = vpop.f32.mrf.mxu3 }
 0x1e1   : > { %v1233_v22 = vadd.f32 %v1149_v5, %v889_v28  ;;  %v892_v28 = vadd.f32 %v891_v1, %v3566_v42  ;;  %v4316_v5 = vld [vmem:[#allocation18_spill] sm:$0xff]  ;;  %v4318_v42 = vld [vmem:[#allocation9_spill] sm:$0xff] }
 0x1e2   : > { %2501 = vmatmul.msk.f32.gmra.mxu0 %vm301_vm8, %v4313_v10  ;;  %v1028_v10 = vrot.slane %v4315_v39, 2  ;;  %v1030_v1 = vrot.slane %v4318_v42, 2 }
 0x1e3   : > { %v1387_v49 = vadd.f32 %v1303_v21, %v1233_v22 }
 0x1e4   : > { %2435 = vmatmul.msk.f32.gmra.mxu2 %vm301_vm8, %v3705_v3  ;;  %2468 = vmatmul.msk.f32.gmra.mxu3 %vm301_vm8, %v4315_v39  ;;  %v3721_v22 = vsel %vm966_vm1, %v1027_v29, %v1028_v10 }
 0x1e5   : > { %v894_v52 = vpop.f32.mrf.mxu1  ;;  %v3707_v23 = vadd.f32 %v1461_v12, %v1387_v49 }
 0x1e7   : > { %v1467_v57 = vpop.f32.mrf.mxu0  ;;  %4314 = vst [vmem:[#allocation30_spill] sm:$0xff] %v3707_v23 }
 0x1e8   : > { %2403 = vmatmul.msk.f32.gmra.mxu1 %vm301_vm8, %v4312_v54  ;;  %v1152_v24 = vpop.f32.mrf.mxu2  ;;  %v1306_v12 = vpop.f32.mrf.mxu3 }
 0x1e9   : > { %v1234_v37 = vadd.f32 %v1152_v24, %v892_v28  ;;  %v4319_v28 = vld [vmem:[#allocation14_spill] sm:$0xff] }
 0x1ea   : > { %2502 = vmatmul.msk.f32.gmra.mxu0 %vm301_vm8, %v4316_v5  ;;  %v895_v5 = vadd.f32 %v894_v52, %v3412_v26  ;;  %v1032_v26 = vrot.slane %v4319_v28, 2  ;;  %v4322_v52 = vld [vmem:[#allocation15_spill] sm:$0xff] }
 0x1eb   : > { %v1388_v54 = vadd.f32 %v1306_v12, %v1234_v37  ;;  %v3736_v37 = vsel %vm966_vm1, %v1028_v10, %v1030_v1  ;;  %v4323_v10 = vld [vmem:[#allocation27_spill] sm:$0xff] }
 0x1ec   : > { %2436 = vmatmul.msk.f32.gmra.mxu2 %vm301_vm8, %v3721_v22  ;;  %2469 = vmatmul.msk.f32.gmra.mxu3 %vm301_vm8, %v4319_v28 }
 0x1ed   : > { %v897_v20 = vpop.f32.mrf.mxu1  ;;  %v3723_v49 = vadd.f32 %v1464_v13, %v1388_v54 }
 0x1ef   : > { %v1470_v21 = vpop.f32.mrf.mxu0  ;;  %4317 = vst [vmem:[#allocation6_spill] sm:$0xff] %v3723_v49 }
 0x1f0   : > { %2404 = vmatmul.msk.f32.gmra.mxu1 %vm301_vm8, %v4315_v39  ;;  %v4320_v39 = vld [vmem:[#allocation22_spill] sm:$0xff]  ;;  %v1155_v29 = vpop.f32.mrf.mxu2  ;;  %v1309_v13 = vpop.f32.mrf.mxu3 }
 0x1f1   : > { %v1235_v24 = vadd.f32 %v1155_v29, %v895_v5  ;;  %v898_v29 = vadd.f32 %v897_v20, %v3428_v56 }
 0x1f2   : > { %2503 = vmatmul.msk.f32.gmra.mxu0 %vm301_vm8, %v4320_v39  ;;  %v1033_v39 = vrot.slane %v4322_v52, 2 }
 0x1f3   : > { %v1389_v12 = vadd.f32 %v1309_v13, %v1235_v24 }
 0x1f4   : > { %2437 = vmatmul.msk.f32.gmra.mxu2 %vm301_vm8, %v3736_v37  ;;  %2470 = vmatmul.msk.f32.gmra.mxu3 %vm301_vm8, %v4322_v52  ;;  %v3754_v13 = vsel %vm966_vm1, %v1032_v26, %v1033_v39  ;;  %v4328_v26 = vld [vmem:[#allocation31_spill] sm:$0xff] }
 0x1f5   : > { %v900_v23 = vpop.f32.mrf.mxu1  ;;  %v3738_v42 = vadd.f32 %v1467_v57, %v1389_v12  ;;  %v387_v57 = vld [vmem:[%s2813_s6 + $0xf0] sm:$0xff]  ;;  %4324 = vst [vmem:[#allocation9_spill] sm:$0xff] %v3754_v13 }
 0x1f6   : > { %420 = vst.msk [vmem:[#allocation2 + $0x181] sm:$0xff] %vm301_vm8, %v387_v57 }
 0x1f7   : > { %v1473_v54 = vpop.f32.mrf.mxu0  ;;  %4321 = vst [vmem:[#allocation7_spill] sm:$0xff] %v3738_v42  ;;  %v4326_v42 = vld [vmem:[#allocation19_spill] sm:$0xff] }
 0x1f8   : > { %2405 = vmatmul.msk.f32.gmra.mxu1 %vm301_vm8, %v4319_v28  ;;  %v1158_v1 = vpop.f32.mrf.mxu2  ;;  %v1312_v28 = vpop.f32.mrf.mxu3  ;;  %v1035_v49 = vrot.slane %v4326_v42, 2 }
 0x1f9   : > { %v1236_v24 = vadd.f32 %v1158_v1, %v898_v29  ;;  %v4327_v1 = vld [vmem:[#allocation23_spill] sm:$0xff] }
 0x1fa   : > { %2504 = vmatmul.msk.f32.gmra.mxu0 %vm301_vm8, %v4323_v10  ;;  %v388_v10 = vld [vmem:[%s2813_s6 + $0xf8] sm:$0xff] }
 0x1fb   : > { %v1390_v12 = vadd.f32 %v1312_v28, %v1236_v24  ;;  %421 = vst.msk [vmem:[#allocation2 + $0x189] sm:$0xff] %vm301_vm8, %v388_v10  ;;  %v3771_v28 = vsel %vm966_vm1, %v1033_v39, %v1035_v49 }
 0x1fc   : > { %2438 = vmatmul.msk.f32.gmra.mxu2 %vm301_vm8, %v3754_v13  ;;  %2471 = vmatmul.msk.f32.gmra.mxu3 %vm301_vm8, %v4327_v1  ;;  %4329 = vst [vmem:[#allocation15_spill] sm:$0xff] %v3771_v28 }
 0x1fd   : > { %v903_v5 = vpop.f32.mrf.mxu1  ;;  %v3756_v20 = vadd.f32 %v1470_v21, %v1390_v12 }
 0x1ff   : > { %v1476_v56 = vpop.f32.mrf.mxu0  ;;  %4325 = vst [vmem:[#allocation14_spill] sm:$0xff] %v3756_v20 }
 0x200   : > { %2406 = vmatmul.msk.f32.gmra.mxu1 %vm301_vm8, %v4322_v52  ;;  %v901_v52 = vadd.f32 %v900_v23, %v3448_v63  ;;  %v1161_v57 = vpop.f32.mrf.mxu2  ;;  %v1315_v24 = vpop.f32.mrf.mxu3  ;;  %v1037_v63 = vrot.slane %v4327_v1, 2  ;;  %v4331_v23 = vld [vmem:[#allocation24_spill] sm:$0xff] }
 0x202   : > { %2505 = vmatmul.msk.f32.gmra.mxu0 %vm301_vm8, %v4328_v26  ;;  %v1237_v21 = vadd.f32 %v1161_v57, %v901_v52  ;;  %v1038_v26 = vrot.slane %v4331_v23, 2  ;;  %v904_v52 = vadd.f32 %v903_v5, %v3469_v35  ;;  %v4332_v57 = vld [vmem:[#allocation35_spill] sm:$0xff]  ;;  %v4335_v5 = vld [vmem:[#allocation28_spill] sm:$0xff] }
 0x203   : > { %v3793_v35 = vld [vmem:[#allocation2 + $0x188] sm:$0xff] }
 0x204   : > { %v1391_v42 = vadd.f32 %v1315_v24, %v1237_v21  ;;  %2439 = vmatmul.msk.f32.gmra.mxu2 %vm301_vm8, %v3771_v28  ;;  %2472 = vmatmul.msk.f32.gmra.mxu3 %vm301_vm8, %v4331_v23  ;;  %v3787_v21 = vsel %vm966_vm1, %v1037_v63, %v1038_v26 }
 0x205   : > { %v906_v29 = vpop.f32.mrf.mxu1  ;;  %4333 = vst [vmem:[#allocation23_spill] sm:$0xff] %v3787_v21 }
 0x206   : > { %v3773_v10 = vadd.f32 %v1473_v54, %v1391_v42 }
 0x207   : > { %v1479_v12 = vpop.f32.mrf.mxu0 }
 0x208   : > { %2407 = vmatmul.msk.f32.gmra.mxu1 %vm301_vm8, %v4327_v1  ;;  %4330 = vst [vmem:[#allocation19_spill] sm:$0xff] %v3773_v10  ;;  %v1164_v49 = vpop.f32.mrf.mxu2  ;;  %v1318_v54 = vpop.f32.mrf.mxu3 }
 0x209   : > { %v1238_v39 = vadd.f32 %v1164_v49, %v904_v52  ;;  %v907_v52 = vadd.f32 %v906_v29, %v3489_v7  ;;  %v4336_v49 = vld [vmem:[#allocation32_spill] sm:$0xff] }
 0x20a   : > { %2506 = vmatmul.msk.f32.gmra.mxu0 %vm301_vm8, %v4332_v57  ;;  %v1040_v57 = vrot.slane %v4335_v5, 2 }
 0x20b   : > { %v1392_v1 = vadd.f32 %v1318_v54, %v1238_v39  ;;  %v1415_v39 = vrot.slane %v3793_v35, 1 }
 0x20c   : > { %2440 = vmatmul.msk.f32.gmra.mxu2 %vm301_vm8, %v3787_v21  ;;  %2473 = vmatmul.msk.f32.gmra.mxu3 %vm301_vm8, %v4336_v49  ;;  %v3808_v7 = vsel %vm966_vm1, %v1038_v26, %v1040_v57 }
 0x20d   : > { %v909_v20 = vpop.f32.mrf.mxu1  ;;  %v3789_v42 = vadd.f32 %v1476_v56, %v1392_v1 }
 0x20e   : > { %v910_v26 = vadd.f32 %v909_v20, %v3510_v40 }
 0x20f   : > { %v1482_v24 = vpop.f32.mrf.mxu0  ;;  %4334 = vst [vmem:[#allocation24_spill] sm:$0xff] %v3789_v42 }
 0x210   : > { %2408 = vmatmul.msk.f32.gmra.mxu1 %vm301_vm8, %v4331_v23  ;;  %v3799_v23 = vld [vmem:[#allocation2 + $0x180] sm:$0xff]  ;;  %v1167_v56 = vpop.f32.mrf.mxu2  ;;  %v1321_v1 = vpop.f32.mrf.mxu3 }
 0x211   : > { %v1414_v63 = vrot.slane %v3799_v23, 1  ;;  %v1239_v54 = vadd.f32 %v1167_v56, %v907_v52  ;;  %v1042_v52 = vrot.slane %v4336_v49, 2  ;;  %v4338_v56 = vld [vmem:[#allocation33_spill] sm:$0xff] }
 0x212   : > { %2507 = vmatmul.msk.f32.gmra.mxu0 %vm301_vm8, %v3328_v62  ;;  %v3817_v62 = vld [vmem:[#allocation2 + $0x190] sm:$0x3]  ;;  %v1043_v28 = vrot.slane %v4338_v56, 2 }
 0x213   : > { %v1393_v29 = vadd.f32 %v1321_v1, %v1239_v54  ;;  %v3811_v42 = vsel %vm524_vm14, %v1414_v63, %v1415_v39  ;;  %v1417_v57 = vrot.slane %v3817_v62, 1 }
 0x214   : > { %4337 = vst [vmem:[#allocation28_spill] sm:$0xff] %v3811_v42  ;;  %2441 = vmatmul.msk.f32.gmra.mxu2 %vm301_vm8, %v3808_v7  ;;  %2474 = vmatmul.msk.f32.gmra.mxu3 %vm301_vm8, %v4338_v56 }
 0x215   : > { %v912_v10 = vpop.f32.mrf.mxu1  ;;  %v3813_v21 = vadd.f32 %v1479_v12, %v1393_v29  ;;  %v3833_v40 = vsel %vm524_vm14, %v1415_v39, %v1417_v57 }
 0x217   : > { %v1485_v5 = vpop.f32.mrf.mxu0 }
 0x218   : > { %2409 = vmatmul.msk.f32.gmra.mxu1 %vm301_vm8, %v4336_v49  ;;  %v1170_v12 = vpop.f32.mrf.mxu2  ;;  %v1324_v54 = vpop.f32.mrf.mxu3  ;;  %v3830_v49 = vsel %vm966_vm1, %v1042_v52, %v1043_v28 }
 0x219   : > { %v1240_v63 = vadd.f32 %v1170_v12, %v910_v26  ;;  %v913_v12 = vadd.f32 %v912_v10, %v3530_v18 }
 0x21a   : > { %2508 = vmatmul.msk.f32.gmra.mxu0 %vm301_vm8, %v3811_v42  ;;  %v1045_v42 = vrot.slane %v3314_v45, 2 }
 0x21b   : > { %v1394_v1 = vadd.f32 %v1324_v54, %v1240_v63 }
 0x21c   : > { %2442 = vmatmul.msk.f32.gmra.mxu2 %vm301_vm8, %v3830_v49  ;;  %2475 = vmatmul.msk.f32.gmra.mxu3 %vm301_vm8, %v3799_v23  ;;  %v3848_v39 = vsel %vm966_vm1, %v1043_v28, %v1045_v42 }
 0x21d   : > { %v915_v13 = vpop.f32.mrf.mxu1  ;;  %v3835_v20 = vadd.f32 %v1482_v24, %v1394_v1 }
 0x21e   : > { %v916_v10 = vadd.f32 %v915_v13, %v3551_v14 }
 0x21f   : > { %v1488_v29 = vpop.f32.mrf.mxu0 }
 0x220   : > { %2410 = vmatmul.msk.f32.gmra.mxu1 %vm301_vm8, %v4338_v56  ;;  %v1173_v52 = vpop.f32.mrf.mxu2  ;;  %v1327_v24 = vpop.f32.mrf.mxu3 }
 0x221   : > { %v1241_v56 = vadd.f32 %v1173_v52, %v913_v12 }
 0x222   : > { %2509 = vmatmul.msk.f32.gmra.mxu0 %vm301_vm8, %v3833_v40 }
 0x223   : > { %v1395_v57 = vadd.f32 %v1327_v24, %v1241_v56 }
 0x224   : > { %2443 = vmatmul.msk.f32.gmra.mxu2 %vm301_vm8, %v3848_v39  ;;  %2476 = vmatmul.msk.f32.gmra.mxu3 %vm301_vm8, %v3793_v35 }
 0x225   : > { %v918_v26 = vpop.f32.mrf.mxu1  ;;  %v3850_v63 = vadd.f32 %v1485_v5, %v1395_v57 }
 0x226   : > { %v919_v13 = vadd.f32 %v918_v26, %v3454_v61 }
 0x227   : > { %v1491_v45 = vpop.f32.mrf.mxu0 }
 0x228   : > { %2511 = vmatmul.msk.f32.vlgmr.msra.gmra.mxu1 %vm301_vm8, %v3360_v4  ;;  %v1176_v4 = vpop.f32.mrf.mxu2  ;;  %v1330_v28 = vpop.f32.mrf.mxu3 }
 0x229   : > { %v1242_v54 = vadd.f32 %v1176_v4, %v916_v10 }
 0x22a   : > { %2610 = vmatmul.msk.f32.vlgmr.msra.gmra.mxu0 %vm301_vm8, %v3385_v31 }
 0x22b   : > { %v1396_v42 = vadd.f32 %v1330_v28, %v1242_v54 }
 0x22c   : > { %2544 = vmatmul.msk.f32.vlgmr.msra.gmra.mxu2 %vm301_vm8, %v3166_v59  ;;  %2577 = vmatmul.msk.f32.vlgmr.msra.gmra.mxu3 %vm301_vm8, %v3201_v30 }
 0x22d   : > { %v921_v18 = vpop.f32.mrf.mxu1  ;;  %v3861_v1 = vadd.f32 %v1488_v29, %v1396_v42 }
 0x22e   : > { %v922_v61 = vadd.f32 %v921_v18, %v3475_v55 }
 0x22f   : > { %v1494_v5 = vpop.f32.mrf.mxu0 }
 0x230   : > { %2512 = vmatmul.msk.f32.gmra.mxu1 %vm301_vm8, %v3372_v19  ;;  %v1179_v12 = vpop.f32.mrf.mxu2  ;;  %v1333_v19 = vpop.f32.mrf.mxu3 }
 0x231   : > { %v1243_v52 = vadd.f32 %v1179_v12, %v919_v13  ;;  %v4339_v12 = vld [vmem:[#allocation45_spill] sm:$0xff] }
 0x232   : > { %2611 = vmatmul.msk.f32.gmra.mxu0 %vm301_vm8, %v3397_v38 }
 0x233   : > { %v1397_v29 = vadd.f32 %v1333_v19, %v1243_v52  ;;  %v4341_v19 = vld [vmem:[#allocation38_spill] sm:$0xff] }
 0x234   : > { %2545 = vmatmul.msk.f32.gmra.mxu2 %vm301_vm8, %v3168_v60  ;;  %2578 = vmatmul.msk.f32.gmra.mxu3 %vm301_vm8, %v3240_v32 }
 0x235   : > { %v924_v14 = vpop.f32.mrf.mxu1  ;;  %v3872_v24 = vadd.f32 %v1491_v45, %v1397_v29 }
 0x236   : > { %v925_v55 = vadd.f32 %v924_v14, %v3495_v58 }
 0x237   : > { %v1497_v56 = vpop.f32.mrf.mxu0 }
 0x238   : > { %2513 = vmatmul.msk.f32.gmra.mxu1 %vm301_vm8, %v3385_v31  ;;  %v1182_v30 = vpop.f32.mrf.mxu2  ;;  %v1336_v31 = vpop.f32.mrf.mxu3 }
 0x239   : > { %v1244_v26 = vadd.f32 %v1182_v30, %v922_v61 }
 0x23a   : > { %2612 = vmatmul.msk.f32.gmra.mxu0 %vm301_vm8, %v3410_v34 }
 0x23b   : > { %v1398_v57 = vadd.f32 %v1336_v31, %v1244_v26  ;;  %v2669_v26 = vld [vmem:[#allocation2 + $0x68] sm:$0xff] }
 0x23c   : > { %2546 = vmatmul.msk.f32.gmra.mxu2 %vm301_vm8, %v3246_v53  ;;  %2579 = vmatmul.msk.f32.gmra.mxu3 %vm301_vm8, %v3277_v33 }
 0x23d   : > { %v927_v59 = vpop.f32.mrf.mxu1  ;;  %v3883_v10 = vadd.f32 %v1494_v5, %v1398_v57  ;;  %v4342_v57 = vld [vmem:[#allocation48_spill] sm:$0xff] }
 0x23e   : > { %v928_v58 = vadd.f32 %v927_v59, %v3516_v2 }
 0x23f   : > { %v1500_v45 = vpop.f32.mrf.mxu0 }
 0x240   : > { %2514 = vmatmul.msk.f32.gmra.mxu1 %vm301_vm8, %v3397_v38  ;;  %v1185_v32 = vpop.f32.mrf.mxu2  ;;  %v1339_v38 = vpop.f32.mrf.mxu3 }
 0x241   : > { %v1245_v18 = vadd.f32 %v1185_v32, %v925_v55  ;;  %v4344_v55 = vld [vmem:[#allocation40_spill] sm:$0xff] }
 0x242   : > { %2613 = vmatmul.msk.f32.gmra.mxu0 %vm301_vm8, %v3426_v16 }
 0x243   : > { %v1399_v4 = vadd.f32 %v1339_v38, %v1245_v18 }
 0x244   : > { %2547 = vmatmul.msk.f32.gmra.mxu2 %vm301_vm8, %v3248_v36  ;;  %2580 = vmatmul.msk.f32.gmra.mxu3 %vm301_vm8, %v3310_v48  ;;  %v2668_v36 = vld [vmem:[#allocation2 + $0x60] sm:$0xff]  ;;  %v4340_v48 = vld [vmem:[#allocation4_spill] sm:$0xff] }
 0x245   : > { %v930_v60 = vpop.f32.mrf.mxu1  ;;  %v3894_v28 = vadd.f32 %v1497_v56, %v1399_v4 }
 0x246   : > { %v931_v52 = vadd.f32 %v930_v60, %v4339_v12  ;;  %v4343_v60 = vld [vmem:[#allocation5_spill] sm:$0xff] }
 0x247   : > { %v1503_v54 = vpop.f32.mrf.mxu0 }
 0x248   : > { %2515 = vmatmul.msk.f32.gmra.mxu1 %vm301_vm8, %v3410_v34  ;;  %v1188_v33 = vpop.f32.mrf.mxu2  ;;  %v1342_v34 = vpop.f32.mrf.mxu3 }
 0x249   : > { %v1246_v42 = vadd.f32 %v1188_v33, %v928_v58  ;;  %v2670_v58 = vld [vmem:[#allocation2 + $0x78] sm:$0xff]  ;;  %v4345_v33 = vld [vmem:[#allocation51_spill] sm:$0xff] }
 0x24a   : > { %2614 = vmatmul.msk.f32.gmra.mxu0 %vm301_vm8, %v3441_v46 }
 0x24b   : > { %v1400_v5 = vadd.f32 %v1342_v34, %v1246_v42  ;;  %v4346_v34 = vld [vmem:[#allocation11_spill] sm:$0xff] }
 0x24c   : > { %2548 = vmatmul.msk.f32.gmra.mxu2 %vm301_vm8, %v2668_v36  ;;  %2581 = vmatmul.msk.f32.gmra.mxu3 %vm301_vm8, %v4340_v48 }
 0x24d   : > { %v933_v53 = vpop.f32.mrf.mxu1  ;;  %v3905_v13 = vadd.f32 %v1500_v45, %v1400_v5  ;;  %v4347_v5 = vld [vmem:[#allocation42_spill] sm:$0xff] }
 0x24e   : > { %v934_v45 = vadd.f32 %v933_v53, %v4342_v57 }
 0x24f   : > { %v1506_v14 = vpop.f32.mrf.mxu0 }
 0x250   : > { %2516 = vmatmul.msk.f32.gmra.mxu1 %vm301_vm8, %v3426_v16  ;;  %v1191_v29 = vpop.f32.mrf.mxu2  ;;  %v1345_v16 = vpop.f32.mrf.mxu3 }
 0x251   : > { %v1247_v56 = vadd.f32 %v1191_v29, %v931_v52  ;;  %v2671_v29 = vld [vmem:[#allocation2 + $0x80] sm:$0xff] }
 0x252   : > { %2615 = vmatmul.msk.f32.gmra.mxu0 %vm301_vm8, %v4341_v19 }
 0x253   : > { %v1401_v59 = vadd.f32 %v1345_v16, %v1247_v56  ;;  %v4348_v56 = vld [vmem:[#allocation54_spill] sm:$0xff] }
 0x254   : > { %2549 = vmatmul.msk.f32.gmra.mxu2 %vm301_vm8, %v2669_v26  ;;  %2582 = vmatmul.msk.f32.gmra.mxu3 %vm301_vm8, %v4343_v60  ;;  %v4350_v26 = vld [vmem:[#allocation44_spill] sm:$0xff] }
 0x255   : > { %v936_v2 = vpop.f32.mrf.mxu1  ;;  %v3915_v30 = vadd.f32 %v1503_v54, %v1401_v59  ;;  %v4349_v59 = vld [vmem:[#allocation16_spill] sm:$0xff] }
 0x256   : > { %v937_v42 = vadd.f32 %v936_v2, %v4345_v33  ;;  %v4353_v33 = vld [vmem:[#allocation47_spill] sm:$0xff] }
 0x257   : > { %v1509_v61 = vpop.f32.mrf.mxu0 }
 0x258   : > { %2517 = vmatmul.msk.f32.gmra.mxu1 %vm301_vm8, %v3441_v46  ;;  %v1194_v32 = vpop.f32.mrf.mxu2  ;;  %v1348_v46 = vpop.f32.mrf.mxu3 }
 0x259   : > { %v1248_v18 = vadd.f32 %v1194_v32, %v934_v45 }
 0x25a   : > { %2616 = vmatmul.msk.f32.gmra.mxu0 %vm301_vm8, %v4344_v55 }
 0x25b   : > { %v1402_v38 = vadd.f32 %v1348_v46, %v1248_v18  ;;  %v2672_v18 = vld [vmem:[#allocation2 + $0x90] sm:$0xff]  ;;  %v4351_v46 = vld [vmem:[#allocation37_spill] sm:$0xff] }
 0x25c   : > { %2550 = vmatmul.msk.f32.gmra.mxu2 %vm301_vm8, %v2670_v58  ;;  %2583 = vmatmul.msk.f32.gmra.mxu3 %vm301_vm8, %v4346_v34  ;;  %v4352_v58 = vld [vmem:[#allocation20_spill] sm:$0xff] }
 0x25d   : > { %v939_v31 = vpop.f32.mrf.mxu1  ;;  %v3925_v54 = vadd.f32 %v1506_v14, %v1402_v38 }
 0x25e   : > { %v940_v16 = vadd.f32 %v939_v31, %v4348_v56  ;;  %v4355_v56 = vld [vmem:[#allocation25_spill] sm:$0xff] }
 0x25f   : > { %v1512_v4 = vpop.f32.mrf.mxu0 }
 0x260   : > { %2518 = vmatmul.msk.f32.gmra.mxu1 %vm301_vm8, %v4341_v19  ;;  %v1197_v36 = vpop.f32.mrf.mxu2  ;;  %v1351_v52 = vpop.f32.mrf.mxu3 }
 0x261   : > { %v1249_v12 = vadd.f32 %v1197_v36, %v937_v42 }
 0x262   : > { %2617 = vmatmul.msk.f32.gmra.mxu0 %vm301_vm8, %v4347_v5 }
 0x263   : > { %v1403_v14 = vadd.f32 %v1351_v52, %v1249_v12  ;;  %v2673_v52 = vld [vmem:[#allocation2 + $0x98] sm:$0xff] }
 0x264   : > { %2551 = vmatmul.msk.f32.gmra.mxu2 %vm301_vm8, %v2671_v29  ;;  %2584 = vmatmul.msk.f32.gmra.mxu3 %vm301_vm8, %v4349_v59 }
 0x265   : > { %v942_v53 = vpop.f32.mrf.mxu1  ;;  %v3935_v19 = vadd.f32 %v1509_v61, %v1403_v14  ;;  %v4354_v14 = vld [vmem:[#allocation39_spill] sm:$0xff] }
 0x266   : > { %v943_v38 = vadd.f32 %v942_v53, %v4351_v46 }
 0x267   : > { %v1515_v48 = vpop.f32.mrf.mxu0 }
 0x268   : > { %2519 = vmatmul.msk.f32.gmra.mxu1 %vm301_vm8, %v4344_v55  ;;  %v1200_v57 = vpop.f32.mrf.mxu2  ;;  %v1354_v60 = vpop.f32.mrf.mxu3 }
 0x269   : > { %v1250_v45 = vadd.f32 %v1200_v57, %v940_v16  ;;  %v4356_v16 = vld [vmem:[#allocation50_spill] sm:$0xff] }
 0x26a   : > { %2618 = vmatmul.msk.f32.gmra.mxu0 %vm301_vm8, %v4350_v26 }
 0x26b   : > { %v1404_v61 = vadd.f32 %v1354_v60, %v1250_v45 }
 0x26c   : > { %2552 = vmatmul.msk.f32.gmra.mxu2 %vm301_vm8, %v2672_v18  ;;  %2585 = vmatmul.msk.f32.gmra.mxu3 %vm301_vm8, %v4352_v58  ;;  %v4357_v18 = vld [vmem:[#allocation41_spill] sm:$0xff] }
 0x26d   : > { %v945_v2 = vpop.f32.mrf.mxu1  ;;  %v3945_v32 = vadd.f32 %v1512_v4, %v1404_v61  ;;  %v2674_v61 = vld [vmem:[#allocation2 + $0xa8] sm:$0xff]  ;;  %v4359_v58 = vld [vmem:[#allocation53_spill] sm:$0xff] }
 0x26e   : > { %v946_v29 = vadd.f32 %v945_v2, %v4354_v14  ;;  %v4360_v14 = vld [vmem:[#allocation43_spill] sm:$0xff] }
 0x26f   : > { %v1518_v55 = vpop.f32.mrf.mxu0 }
 0x270   : > { %2520 = vmatmul.msk.f32.gmra.mxu1 %vm301_vm8, %v4347_v5  ;;  %v1203_v42 = vpop.f32.mrf.mxu2  ;;  %v1357_v5 = vpop.f32.mrf.mxu3 }
 0x271   : > { %v1251_v34 = vadd.f32 %v1203_v42, %v943_v38  ;;  %v4358_v38 = vld [vmem:[#allocation29_spill] sm:$0xff] }
 0x272   : > { %2619 = vmatmul.msk.f32.gmra.mxu0 %vm301_vm8, %v4353_v33 }
 0x273   : > { %v1405_v4 = vadd.f32 %v1357_v5, %v1251_v34 }
 0x274   : > { %2553 = vmatmul.msk.f32.gmra.mxu2 %vm301_vm8, %v2673_v52  ;;  %2586 = vmatmul.msk.f32.gmra.mxu3 %vm301_vm8, %v4355_v56  ;;  %v2675_v52 = vld [vmem:[#allocation2 + $0xb0] sm:$0xff]  ;;  %v4361_v56 = vld [vmem:[#allocation34_spill] sm:$0xff] }
 0x275   : > { %v948_v31 = vpop.f32.mrf.mxu1  ;;  %v3955_v12 = vadd.f32 %v1515_v48, %v1405_v4 }
 0x276   : > { %v949_v46 = vadd.f32 %v948_v31, %v4357_v18  ;;  %v2676_v18 = vld [vmem:[#allocation2 + $0xc0] sm:$0xff] }
 0x277   : > { %v1521_v36 = vpop.f32.mrf.mxu0 }
 0x278   : > { %2521 = vmatmul.msk.f32.gmra.mxu1 %vm301_vm8, %v4350_v26  ;;  %v1206_v59 = vpop.f32.mrf.mxu2  ;;  %v1360_v26 = vpop.f32.mrf.mxu3 }
 0x279   : > { %v1252_v57 = vadd.f32 %v1206_v59, %v946_v29  ;;  %v4362_v59 = vld [vmem:[#allocation56_spill] sm:$0xff] }
 0x27a   : > { %2620 = vmatmul.msk.f32.gmra.mxu0 %vm301_vm8, %v4356_v16 }
 0x27b   : > { %v1406_v48 = vadd.f32 %v1360_v26, %v1252_v57 }
 0x27c   : > { %2554 = vmatmul.msk.f32.gmra.mxu2 %vm301_vm8, %v2674_v61  ;;  %2587 = vmatmul.msk.f32.gmra.mxu3 %vm301_vm8, %v4358_v38 }
 0x27d   : > { %v951_v53 = vpop.f32.mrf.mxu1  ;;  %v3965_v60 = vadd.f32 %v1518_v55, %v1406_v48 }
 0x27e   : > { %v952_v29 = vadd.f32 %v951_v53, %v4360_v14  ;;  %v2677_v14 = vld [vmem:[#allocation2 + $0xc8] sm:$0xff] }
 0x27f   : > { %v1524_v45 = vpop.f32.mrf.mxu0 }
 0x280   : > { %2522 = vmatmul.msk.f32.gmra.mxu1 %vm301_vm8, %v4353_v33  ;;  %v1209_v42 = vpop.f32.mrf.mxu2  ;;  %v1363_v33 = vpop.f32.mrf.mxu3 }
 0x281   : > { %v1253_v34 = vadd.f32 %v1209_v42, %v949_v46  ;;  %v4363_v46 = vld [vmem:[#allocation46_spill] sm:$0xff]  ;;  %v4364_v42 = vld [vmem:[#allocation8_spill] sm:$0xff] }
 0x282   : > { %2621 = vmatmul.msk.f32.gmra.mxu0 %vm301_vm8, %v4359_v58 }
 0x283   : > { %v1407_v55 = vadd.f32 %v1363_v33, %v1253_v34 }
 0x284   : > { %2555 = vmatmul.msk.f32.gmra.mxu2 %vm301_vm8, %v2675_v52  ;;  %2588 = vmatmul.msk.f32.gmra.mxu3 %vm301_vm8, %v4361_v56 }
 0x285   : > { %v954_v2 = vpop.f32.mrf.mxu1  ;;  %v3975_v4 = vadd.f32 %v1521_v36, %v1407_v55 }
 0x286   : > { %v955_v38 = vadd.f32 %v954_v2, %v4363_v46  ;;  %v2678_v46 = vld [vmem:[#allocation2 + $0xd8] sm:$0xff] }
 0x287   : > { %v1527_v5 = vpop.f32.mrf.mxu0 }
 0x288   : > { %2523 = vmatmul.msk.f32.gmra.mxu1 %vm301_vm8, %v4356_v16  ;;  %v1212_v57 = vpop.f32.mrf.mxu2  ;;  %v1366_v16 = vpop.f32.mrf.mxu3 }
 0x289   : > { %v1254_v26 = vadd.f32 %v1212_v57, %v952_v29  ;;  %v4365_v29 = vld [vmem:[#allocation49_spill] sm:$0xff]  ;;  %v4366_v57 = vld [vmem:[#allocation12_spill] sm:$0xff] }
 0x28a   : > { %2622 = vmatmul.msk.f32.gmra.mxu0 %vm301_vm8, %v4362_v59 }
 0x28b   : > { %v1408_v36 = vadd.f32 %v1366_v16, %v1254_v26 }
 0x28c   : > { %2556 = vmatmul.msk.f32.gmra.mxu2 %vm301_vm8, %v2676_v18  ;;  %2589 = vmatmul.msk.f32.gmra.mxu3 %vm301_vm8, %v4364_v42 }
 0x28d   : > { %v957_v31 = vpop.f32.mrf.mxu1  ;;  %v3985_v61 = vadd.f32 %v1524_v45, %v1408_v36 }
 0x28e   : > { %v958_v56 = vadd.f32 %v957_v31, %v4365_v29  ;;  %v2679_v29 = vld [vmem:[#allocation2 + $0xe0] sm:$0xff] }
 0x28f   : > { %v1530_v48 = vpop.f32.mrf.mxu0 }
 0x290   : > { %2524 = vmatmul.msk.f32.gmra.mxu1 %vm301_vm8, %v4359_v58  ;;  %v1215_v34 = vpop.f32.mrf.mxu2  ;;  %v1369_v58 = vpop.f32.mrf.mxu3 }
 0x291   : > { %v1255_v33 = vadd.f32 %v1215_v34, %v955_v38  ;;  %v4367_v38 = vld [vmem:[#allocation52_spill] sm:$0xff]  ;;  %v4368_v34 = vld [vmem:[#allocation17_spill] sm:$0xff] }
 0x292   : > { %2623 = vmatmul.msk.f32.gmra.mxu0 %vm301_vm8, %v3612_v44 }
 0x293   : > { %v1409_v45 = vadd.f32 %v1369_v58, %v1255_v33 }
 0x294   : > { %2557 = vmatmul.msk.f32.gmra.mxu2 %vm301_vm8, %v2677_v14  ;;  %2590 = vmatmul.msk.f32.gmra.mxu3 %vm301_vm8, %v4366_v57 }
 0x295   : > { %v960_v53 = vpop.f32.mrf.mxu1  ;;  %v3995_v52 = vadd.f32 %v1527_v5, %v1409_v45 }
 0x296   : > { %v961_v42 = vadd.f32 %v960_v53, %v4367_v38  ;;  %v2680_v38 = vld [vmem:[#allocation2 + $0xf0] sm:$0xff] }
 0x297   : > { %v1533_v55 = vpop.f32.mrf.mxu0 }
 0x298   : > { %2525 = vmatmul.msk.f32.gmra.mxu1 %vm301_vm8, %v4362_v59  ;;  %v1218_v26 = vpop.f32.mrf.mxu2  ;;  %v1372_v59 = vpop.f32.mrf.mxu3 }
 0x299   : > { %v1256_v16 = vadd.f32 %v1218_v26, %v958_v56  ;;  %v4369_v56 = vld [vmem:[#allocation55_spill] sm:$0xff]  ;;  %v4370_v26 = vld [vmem:[#allocation21_spill] sm:$0xff] }
 0x29a   : > { %2624 = vmatmul.msk.f32.gmra.mxu0 %vm301_vm8, %v3628_v25 }
 0x29b   : > { %v1410_v5 = vadd.f32 %v1372_v59, %v1256_v16 }
 0x29c   : > { %2558 = vmatmul.msk.f32.gmra.mxu2 %vm301_vm8, %v2678_v46  ;;  %2591 = vmatmul.msk.f32.gmra.mxu3 %vm301_vm8, %v4368_v34 }
 0x29d   : > { %v963_v2 = vpop.f32.mrf.mxu1  ;;  %v4005_v18 = vadd.f32 %v1530_v48, %v1410_v5 }
 0x29e   : > { %v964_v57 = vadd.f32 %v963_v2, %v4369_v56 }
 0x29f   : > { %v1536_v36 = vpop.f32.mrf.mxu0 }
 0x2a0   : > { %2526 = vmatmul.msk.f32.gmra.mxu1 %vm301_vm8, %v3612_v44  ;;  %v1221_v33 = vpop.f32.mrf.mxu2  ;;  %v1375_v44 = vpop.f32.mrf.mxu3 }
 0x2a1   : > { %v1257_v58 = vadd.f32 %v1221_v33, %v961_v42 }
 0x2a2   : > { %2625 = vmatmul.msk.f32.gmra.mxu0 %vm301_vm8, %v3643_v43 }
 0x2a3   : > { %v1411_v48 = vadd.f32 %v1375_v44, %v1257_v58  ;;  %v2681_v44 = vld [vmem:[#allocation2 + $0xf8] sm:$0xff] }
 0x2a4   : > { %2559 = vmatmul.msk.f32.gmra.mxu2 %vm301_vm8, %v2679_v29  ;;  %2592 = vmatmul.msk.f32.gmra.mxu3 %vm301_vm8, %v4370_v26 }
 0x2a5   : > { %v1600_v31 = vpop.f32.mrf.mxu1  ;;  %v4015_v14 = vadd.f32 %v1533_v55, %v1411_v48 }
 0x2a6   : > { %v1696_v42 = vadd.f32 %v1600_v31, %v3614_v0 }
 0x2a7   : > { %v2069_v45 = vpop.f32.mrf.mxu0 }
 0x2a8   : > { %2527 = vmatmul.msk.f32.gmra.mxu1 %vm301_vm8, %v3628_v25  ;;  %v1224_v16 = vpop.f32.mrf.mxu2  ;;  %v1378_v25 = vpop.f32.mrf.mxu3 }
 0x2a9   : > { %v1258_v59 = vadd.f32 %v1224_v16, %v964_v57 }
 0x2aa   : > { %2626 = vmatmul.msk.f32.gmra.mxu0 %vm301_vm8, %v3659_v15 }
 0x2ab   : > { %v1412_v55 = vadd.f32 %v1378_v25, %v1258_v59 }
 0x2ac   : > { %2560 = vmatmul.msk.f32.gmra.mxu2 %vm301_vm8, %v2680_v38  ;;  %2593 = vmatmul.msk.f32.gmra.mxu3 %vm301_vm8, %v3230_v47 }
 0x2ad   : > { %v1603_v53 = vpop.f32.mrf.mxu1  ;;  %v4025_v46 = vadd.f32 %v1536_v36, %v1412_v55 }
 0x2ae   : > { %v1697_v0 = vadd.f32 %v1603_v53, %v3630_v41 }
 0x2af   : > { %v2072_v5 = vpop.f32.mrf.mxu0 }
 0x2b0   : > { %2528 = vmatmul.msk.f32.gmra.mxu1 %vm301_vm8, %v3643_v43  ;;  %v1754_v34 = vpop.f32.mrf.mxu2  ;;  %v1912_v43 = vpop.f32.mrf.mxu3 }
 0x2b1   : > { %v1850_v33 = vadd.f32 %v1754_v34, %v1696_v42 }
 0x2b2   : > { %2627 = vmatmul.msk.f32.gmra.mxu0 %vm301_vm8, %v3674_v17 }
 0x2b3   : > { %v2008_v36 = vadd.f32 %v1912_v43, %v1850_v33  ;;  %v2684_v43 = vld [vmem:[#allocation2 + $0x120] sm:$0xff] }
 0x2b4   : > { %2561 = vmatmul.msk.f32.gmra.mxu2 %vm301_vm8, %v2681_v44  ;;  %2594 = vmatmul.msk.f32.gmra.mxu3 %vm301_vm8, %v3266_v6 }
 0x2b5   : > { %v1606_v2 = vpop.f32.mrf.mxu1  ;;  %v2165_v48 = vadd.f32 %v2069_v45, %v2008_v36  ;;  %v2682_v45 = vld [vmem:[#allocation2 + $0x108] sm:$0xff] }
 0x2b6   : > { %v1698_v53 = vadd.f32 %v1606_v2, %v3645_v11 }
 0x2b7   : > { %v2075_v58 = vpop.f32.mrf.mxu0  ;;  %2197 = vxpose.xlu0.b32.start [1/16] (narrow) %v2165_v48, 8 }
 0x2b8   : > { %2529 = vmatmul.msk.f32.gmra.mxu1 %vm301_vm8, %v3659_v15  ;;  %v1757_v47 = vpop.f32.mrf.mxu2  ;;  %v1915_v15 = vpop.f32.mrf.mxu3 }
 0x2b9   : > { %v1851_v31 = vadd.f32 %v1757_v47, %v1697_v0  ;;  %v2685_v47 = vld [vmem:[#allocation2 + $0x128] sm:$0xff] }
 0x2ba   : > { %2628 = vmatmul.msk.f32.gmra.mxu0 %vm301_vm8, %v3690_v8 }
 0x2bb   : > { %v2009_v56 = vadd.f32 %v1915_v15, %v1851_v31  ;;  %v4372_v31 = vld [vmem:[#allocation26_spill] sm:$0xff] }
 0x2bc   : > { %2562 = vmatmul.msk.f32.gmra.mxu2 %vm301_vm8, %v2682_v45  ;;  %2595 = vmatmul.msk.f32.gmra.mxu3 %vm301_vm8, %v3302_v51 }
 0x2bd   : > { %v1609_v29 = vpop.f32.mrf.mxu1  ;;  %v2166_v26 = vadd.f32 %v2072_v5, %v2009_v56  ;;  %v2683_v5 = vld [vmem:[#allocation2 + $0x110] sm:$0xff]  ;;  %v4373_v56 = vld [vmem:[#allocation13_spill] sm:$0xff] }
 0x2be   : > { %v1699_v38 = vadd.f32 %v1609_v29, %v3661_v9 }
 0x2bf   : > { %v2078_v57 = vpop.f32.mrf.mxu0  ;;  %2198 = vxpose.xlu0.b32.cont [2/16] (narrow) %v2166_v26, 8  ;;  %v4374_v26 = vld [vmem:[#allocation9_spill] sm:$0xff] }
 0x2c0   : > { %2530 = vmatmul.msk.f32.gmra.mxu1 %vm301_vm8, %v3674_v17  ;;  %v1760_v6 = vpop.f32.mrf.mxu2  ;;  %v1918_v17 = vpop.f32.mrf.mxu3 }
 0x2c1   : > { %v1852_v16 = vadd.f32 %v1760_v6, %v1698_v53 }
 0x2c2   : > { %2629 = vmatmul.msk.f32.gmra.mxu0 %vm301_vm8, %v3705_v3 }
 0x2c3   : > { %v2010_v59 = vadd.f32 %v1918_v17, %v1852_v16  ;;  %v2686_v16 = vld [vmem:[#allocation2 + $0x138] sm:$0xff] }
 0x2c4   : > { %2563 = vmatmul.msk.f32.gmra.mxu2 %vm301_vm8, %v2683_v5  ;;  %2596 = vmatmul.msk.f32.gmra.mxu3 %vm301_vm8, %v3325_v27  ;;  %v4371_v27 = vld [vmem:[#allocation10_spill] sm:$0xff] }
 0x2c5   : > { %v1612_v41 = vpop.f32.mrf.mxu1  ;;  %v2167_v55 = vadd.f32 %v2075_v58, %v2010_v59  ;;  %v4375_v59 = vld [vmem:[#allocation30_spill] sm:$0xff] }
 0x2c6   : > { %v1700_v36 = vadd.f32 %v1612_v41, %v3676_v50 }
 0x2c7   : > { %v2081_v25 = vpop.f32.mrf.mxu0  ;;  %2199 = vxpose.xlu0.b32.cont [3/16] (narrow) %v2167_v55, 8  ;;  %v4376_v55 = vld [vmem:[#allocation18_spill] sm:$0xff] }
 0x2c8   : > { %2531 = vmatmul.msk.f32.gmra.mxu1 %vm301_vm8, %v3690_v8  ;;  %v1763_v51 = vpop.f32.mrf.mxu2  ;;  %v1921_v8 = vpop.f32.mrf.mxu3 }
 0x2c9   : > { %v1853_v2 = vadd.f32 %v1763_v51, %v1699_v38 }
 0x2ca   : > { %2630 = vmatmul.msk.f32.gmra.mxu0 %vm301_vm8, %v3721_v22 }
 0x2cb   : > { %v2011_v42 = vadd.f32 %v1921_v8, %v1853_v2 }
 0x2cc   : > { %2564 = vmatmul.msk.f32.gmra.mxu2 %vm301_vm8, %v2684_v43  ;;  %2597 = vmatmul.msk.f32.gmra.mxu3 %vm301_vm8, %v4371_v27  ;;  %v4380_v27 = vld [vmem:[#allocation23_spill] sm:$0xff] }
 0x2cd   : > { %v1615_v11 = vpop.f32.mrf.mxu1  ;;  %v2168_v33 = vadd.f32 %v2078_v57, %v2011_v42  ;;  %v2687_v42 = vld [vmem:[#allocation2 + $0x140] sm:$0xff] }
 0x2ce   : > { %v1701_v15 = vadd.f32 %v1615_v11, %v4372_v31  ;;  %v4377_v11 = vld [vmem:[#allocation15_spill] sm:$0xff] }
 0x2cf   : > { %v2084_v34 = vpop.f32.mrf.mxu0  ;;  %2200 = vxpose.xlu0.b32.cont [4/16] (narrow) %v2168_v33, 8  ;;  %v4378_v33 = vld [vmem:[#allocation6_spill] sm:$0xff] }
 0x2d0   : > { %2532 = vmatmul.msk.f32.gmra.mxu1 %vm301_vm8, %v3705_v3  ;;  %v1766_v58 = vpop.f32.mrf.mxu2  ;;  %v1924_v3 = vpop.f32.mrf.mxu3 }
 0x2d1   : > { %v1854_v44 = vadd.f32 %v1766_v58, %v1700_v36 }
 0x2d2   : > { %2631 = vmatmul.msk.f32.gmra.mxu0 %vm301_vm8, %v3736_v37 }
 0x2d3   : > { %v2012_v48 = vadd.f32 %v1924_v3, %v1854_v44 }
 0x2d4   : > { %2565 = vmatmul.msk.f32.gmra.mxu2 %vm301_vm8, %v2685_v47  ;;  %2598 = vmatmul.msk.f32.gmra.mxu3 %vm301_vm8, %v4373_v56 }
 0x2d5   : > { %v1618_v9 = vpop.f32.mrf.mxu1  ;;  %v2169_v0 = vadd.f32 %v2081_v25, %v2012_v48 }
 0x2d6   : > { %v1702_v25 = vadd.f32 %v1618_v9, %v4375_v59  ;;  %v4379_v9 = vld [vmem:[#allocation22_spill] sm:$0xff]  ;;  %v4384_v59 = vld [vmem:[#allocation31_spill] sm:$0xff] }
 0x2d7   : > { %v2087_v29 = vpop.f32.mrf.mxu0  ;;  %2201 = vxpose.xlu0.b32.cont [5/16] (narrow) %v2169_v0, 8  ;;  %v2688_v0 = vld [vmem:[#allocation2 + $0x150] sm:$0xff] }
 0x2d8   : > { %2533 = vmatmul.msk.f32.gmra.mxu1 %vm301_vm8, %v3721_v22  ;;  %v1769_v57 = vpop.f32.mrf.mxu2  ;;  %v1927_v22 = vpop.f32.mrf.mxu3 }
 0x2d9   : > { %v1855_v45 = vadd.f32 %v1769_v57, %v1701_v15  ;;  %v4382_v15 = vld [vmem:[#allocation27_spill] sm:$0xff] }
 0x2da   : > { %2632 = vmatmul.msk.f32.gmra.mxu0 %vm301_vm8, %v4374_v26 }
 0x2db   : > { %v2013_v41 = vadd.f32 %v1927_v22, %v1855_v45 }
 0x2dc   : > { %2566 = vmatmul.msk.f32.gmra.mxu2 %vm301_vm8, %v2686_v16  ;;  %2599 = vmatmul.msk.f32.gmra.mxu3 %vm301_vm8, %v4376_v55  ;;  %v4383_v16 = vld [vmem:[#allocation14_spill] sm:$0xff] }
 0x2dd   : > { %v1621_v50 = vpop.f32.mrf.mxu1  ;;  %v2170_v6 = vadd.f32 %v2084_v34, %v2013_v41 }
 0x2de   : > { %v1703_v43 = vadd.f32 %v1621_v50, %v4378_v33  ;;  %v4381_v50 = vld [vmem:[#allocation7_spill] sm:$0xff] }
 0x2df   : > { %v2090_v53 = vpop.f32.mrf.mxu0  ;;  %2202 = vxpose.xlu0.b32.cont [6/16] (narrow) %v2170_v6, 8 }
 0x2e0   : > { %2534 = vmatmul.msk.f32.gmra.mxu1 %vm301_vm8, %v3736_v37  ;;  %v1772_v5 = vpop.f32.mrf.mxu2  ;;  %v1930_v37 = vpop.f32.mrf.mxu3 }
 0x2e1   : > { %v1856_v38 = vadd.f32 %v1772_v5, %v1702_v25 }
 0x2e2   : > { %2633 = vmatmul.msk.f32.gmra.mxu0 %vm301_vm8, %v4377_v11 }
 0x2e3   : > { %v2014_v51 = vadd.f32 %v1930_v37, %v1856_v38 }
 0x2e4   : > { %2567 = vmatmul.msk.f32.gmra.mxu2 %vm301_vm8, %v2687_v42  ;;  %2600 = vmatmul.msk.f32.gmra.mxu3 %vm301_vm8, %v4379_v9 }
 0x2e5   : > { %v1624_v17 = vpop.f32.mrf.mxu1  ;;  %v2171_v8 = vadd.f32 %v2087_v29, %v2014_v51  ;;  %v2690_v51 = vld [vmem:[#allocation2 + $0x168] sm:$0xff] }
 0x2e6   : > { %v1704_v31 = vadd.f32 %v1624_v17, %v4381_v50  ;;  %v4388_v50 = vld [vmem:[#allocation36_spill] sm:$0xff] }
 0x2e7   : > { %v2093_v2 = vpop.f32.mrf.mxu0  ;;  %2203 = vxpose.xlu0.b32.cont [7/16] (narrow) %v2171_v8, 8  ;;  %v4385_v8 = vld [vmem:[#allocation19_spill] sm:$0xff] }
 0x2e8   : > { %2535 = vmatmul.msk.f32.gmra.mxu1 %vm301_vm8, %v4374_v26  ;;  %v1775_v36 = vpop.f32.mrf.mxu2  ;;  %v1933_v44 = vpop.f32.mrf.mxu3 }
 0x2e9   : > { %v1857_v58 = vadd.f32 %v1775_v36, %v1703_v43  ;;  %v1572_v43 = vrot.slane %v3793_v35, 2 }
 0x2ea   : > { %2634 = vmatmul.msk.f32.gmra.mxu0 %vm301_vm8, %v4380_v27 }
 0x2eb   : > { %v2015_v3 = vadd.f32 %v1933_v44, %v1857_v58 }
 0x2ec   : > { %2568 = vmatmul.msk.f32.gmra.mxu2 %vm301_vm8, %v2688_v0  ;;  %2601 = vmatmul.msk.f32.gmra.mxu3 %vm301_vm8, %v4382_v15  ;;  %v4387_v0 = vld [vmem:[#allocation24_spill] sm:$0xff]  ;;  %v1574_v15 = vrot.slane %v3817_v62, 2 }
 0x2ed   : > { %v1627_v34 = vpop.f32.mrf.mxu1  ;;  %v2172_v29 = vadd.f32 %v2090_v53, %v2015_v3  ;;  %v2689_v53 = vld [vmem:[#allocation2 + $0x158] sm:$0xff]  ;;  %v2691_v3 = vld [vmem:[#allocation2 + $0x170] sm:$0xff] }
 0x2ee   : > { %v1705_v17 = vadd.f32 %v1627_v34, %v4383_v16  ;;  %v4386_v34 = vld [vmem:[#allocation35_spill] sm:$0xff] }
 0x2ef   : > { %v2096_v48 = vpop.f32.mrf.mxu0  ;;  %2204 = vxpose.xlu0.b32.cont [8/16] (narrow) %v2172_v29, 8 }
 0x2f0   : > { %2536 = vmatmul.msk.f32.gmra.mxu1 %vm301_vm8, %v4377_v11  ;;  %v1778_v56 = vpop.f32.mrf.mxu2  ;;  %v1936_v26 = vpop.f32.mrf.mxu3 }
 0x2f1   : > { %v1858_v57 = vadd.f32 %v1778_v56, %v1704_v31 }
 0x2f2   : > { %2635 = vmatmul.msk.f32.gmra.mxu0 %vm301_vm8, %v3808_v7 }
 0x2f3   : > { %v2016_v45 = vadd.f32 %v1936_v26, %v1858_v57 }
 0x2f4   : > { %2569 = vmatmul.msk.f32.gmra.mxu2 %vm301_vm8, %v2689_v53  ;;  %2602 = vmatmul.msk.f32.gmra.mxu3 %vm301_vm8, %v4384_v59 }
 0x2f5   : > { %v1630_v47 = vpop.f32.mrf.mxu1  ;;  %v2173_v41 = vadd.f32 %v2093_v2, %v2016_v45 }
 0x2f6   : > { %v1706_v42 = vadd.f32 %v1630_v47, %v4385_v8 }
 0x2f7   : > { %v2099_v22 = vpop.f32.mrf.mxu0  ;;  %2205 = vxpose.xlu0.b32.cont [9/16] (narrow) %v2173_v41, 8 }
 0x2f8   : > { %2537 = vmatmul.msk.f32.gmra.mxu1 %vm301_vm8, %v4380_v27  ;;  %v1781_v25 = vpop.f32.mrf.mxu2  ;;  %v1939_v5 = vpop.f32.mrf.mxu3 }
 0x2f9   : > { %v1859_v55 = vadd.f32 %v1781_v25, %v1705_v17  ;;  %v474_v17 = vld [vmem:[#allocation2 + $0x1a0] sm:$0xff] }
 0x2fa   : > { %2636 = vmatmul.msk.f32.gmra.mxu0 %vm301_vm8, %v3830_v49  ;;  %v2041_v25 = vrot.slane %v474_v17, 2  ;;  %v1884_v8 = vrot.slane %v474_v17, 1 }
 0x2fb   : > { %v2017_v11 = vadd.f32 %v1939_v5, %v1859_v55 }
 0x2fc   : > { %2570 = vmatmul.msk.f32.gmra.mxu2 %vm301_vm8, %v2690_v51  ;;  %2603 = vmatmul.msk.f32.gmra.mxu3 %vm301_vm8, %v4386_v34 }
 0x2fd   : > { %v1633_v6 = vpop.f32.mrf.mxu1  ;;  %v2174_v37 = vadd.f32 %v2096_v48, %v2017_v11 }
 0x2fe   : > { %v1707_v47 = vadd.f32 %v1633_v6, %v4387_v0  ;;  %v4389_v6 = vld [vmem:[#allocation28_spill] sm:$0xff] }
 0x2ff   : > { %v2102_v38 = vpop.f32.mrf.mxu0  ;;  %2206 = vxpose.xlu0.b32.cont [10/16] (narrow) %v2174_v37, 8 }
 0x300   : > { %2538 = vmatmul.msk.f32.gmra.mxu1 %vm301_vm8, %v3808_v7  ;;  %v1784_v33 = vpop.f32.mrf.mxu2  ;;  %v1571_v7 = vrot.slane %v3799_v23, 2  ;;  %v1942_v36 = vpop.f32.mrf.mxu3 }
 0x301   : > { %v1860_v9 = vadd.f32 %v1784_v33, %v1706_v42  ;;  %v475_v42 = vld [vmem:[#allocation2 + $0x1a8] sm:$0x3] }
 0x302   : > { %2637 = vmatmul.msk.f32.gmra.mxu0 %vm301_vm8, %v3848_v39  ;;  %v1573_v48 = vsel %vm966_vm1, %v1571_v7, %v1572_v43  ;;  %v2043_v33 = vrot.slane %v475_v42, 2 }
 0x303   : > { %v2018_v27 = vadd.f32 %v1942_v36, %v1860_v9 }
 0x304   : > { %2571 = vmatmul.msk.f32.gmra.mxu2 %vm301_vm8, %v2691_v3  ;;  %2604 = vmatmul.msk.f32.gmra.mxu3 %vm301_vm8, %v4388_v50 }
 0x305   : > { %v1636_v2 = vpop.f32.mrf.mxu1  ;;  %v2175_v44 = vadd.f32 %v2099_v22, %v2018_v27  ;;  %v1575_v22 = vsel %vm966_vm1, %v1572_v43, %v1574_v15 }
 0x306   : > { %v1708_v53 = vadd.f32 %v1636_v2, %v3813_v21 }
 0x307   : > { %v2105_v58 = vpop.f32.mrf.mxu0  ;;  %2207 = vxpose.xlu0.b32.cont [11/16] (narrow) %v2175_v44, 8  ;;  %v1886_v44 = vrot.slane %v475_v42, 1 }
 0x308   : > { %2539 = vmatmul.msk.f32.gmra.mxu1 %vm301_vm8, %v3830_v49  ;;  %v1787_v31 = vpop.f32.mrf.mxu2  ;;  %v1945_v56 = vpop.f32.mrf.mxu3 }
 0x309   : > { %v1861_v49 = vadd.f32 %v1787_v31, %v1707_v47  ;;  %v1887_v0 = vsel %vm524_vm14, %v1884_v8, %v1886_v44 }
 0x30a   : > { %2638 = vmatmul.msk.f32.gmra.mxu0 %vm301_vm8, %v1573_v48 }
 0x30b   : > { %v2019_v57 = vadd.f32 %v1945_v56, %v1861_v49 }
 0x30c   : > { %2572 = vmatmul.msk.f32.gmra.mxu2 %vm301_vm8, %v3799_v23  ;;  %2605 = vmatmul.msk.f32.gmra.mxu3 %vm301_vm8, %v4389_v6 }
 0x30d   : > { %v1639_v29 = vpop.f32.mrf.mxu1  ;;  %v2176_v45 = vadd.f32 %v2102_v38, %v2019_v57 }
 0x30e   : > { %v1709_v37 = vadd.f32 %v1639_v29, %v3835_v20 }
 0x30f   : > { %v2108_v26 = vpop.f32.mrf.mxu0  ;;  %2208 = vxpose.xlu0.b32.cont [12/16] (narrow) %v2176_v45, 8 }
 0x310   : > { %2540 = vmatmul.msk.f32.gmra.mxu1 %vm301_vm8, %v3848_v39  ;;  %v1790_v16 = vpop.f32.mrf.mxu2  ;;  %v473_v39 = vld [vmem:[#allocation2 + $0x198] sm:$0xff]  ;;  %v1948_v23 = vpop.f32.mrf.mxu3 }
 0x311   : > { %v1862_v62 = vadd.f32 %v1790_v16, %v1708_v53  ;;  %v2040_v59 = vrot.slane %v473_v39, 2  ;;  %v1883_v2 = vrot.slane %v473_v39, 1 }
 0x312   : > { %2639 = vmatmul.msk.f32.gmra.mxu0 %vm301_vm8, %v1575_v22 }
 0x313   : > { %v2020_v55 = vadd.f32 %v1948_v23, %v1862_v62  ;;  %v2042_v21 = vsel %vm966_vm1, %v2040_v59, %v2041_v25  ;;  %v1885_v43 = vsel %vm524_vm14, %v1883_v2, %v1884_v8 }
 0x314   : > { %2573 = vmatmul.msk.f32.gmra.mxu2 %vm301_vm8, %v3793_v35  ;;  %2606 = vmatmul.msk.f32.gmra.mxu3 %vm301_vm8, %v3833_v40  ;;  %v2044_v40 = vsel %vm966_vm1, %v2041_v25, %v2043_v33 }
 0x315   : > { %v1642_v41 = vpop.f32.mrf.mxu1  ;;  %v2177_v11 = vadd.f32 %v2105_v58, %v2020_v55 }
 0x316   : > { %v1710_v27 = vadd.f32 %v1642_v41, %v3850_v63 }
 0x317   : > { %v2111_v5 = vpop.f32.mrf.mxu0  ;;  %2209 = vxpose.xlu0.b32.cont [13/16] (narrow) %v2177_v11, 8 }
 0x318   : > { %2541 = vmatmul.msk.f32.gmra.mxu1 %vm301_vm8, %v1573_v48  ;;  %v1793_v51 = vpop.f32.mrf.mxu2  ;;  %v1951_v35 = vpop.f32.mrf.mxu3 }
 0x319   : > { %v1863_v34 = vadd.f32 %v1793_v51, %v1709_v37 }
 0x31a   : > { %2640 = vmatmul.msk.f32.gmra.mxu0 %vm301_vm8, %v2042_v21 }
 0x31b   : > { %v2021_v7 = vadd.f32 %v1951_v35, %v1863_v34 }
 0x31c   : > { %2574 = vmatmul.msk.f32.gmra.mxu2 %vm301_vm8, %v473_v39  ;;  %2607 = vmatmul.msk.f32.gmra.mxu3 %vm301_vm8, %v1885_v43 }
 0x31d   : > { %v1645_v38 = vpop.f32.mrf.mxu1  ;;  %v2178_v20 = vadd.f32 %v2108_v26, %v2021_v7 }
 0x31e   : > { %v1711_v49 = vadd.f32 %v1645_v38, %v3861_v1 }
 0x31f   : > { %v2114_v9 = vpop.f32.mrf.mxu0  ;;  %2210 = vxpose.xlu0.b32.cont [14/16] (narrow) %v2178_v20, 8 }
 0x320   : > { %2542 = vmatmul.msk.f32.gmra.mxu1 %vm301_vm8, %v1575_v22  ;;  %v1796_v58 = vpop.f32.mrf.mxu2  ;;  %v1954_v48 = vpop.f32.mrf.mxu3 }
 0x321   : > { %v1864_v3 = vadd.f32 %v1796_v58, %v1710_v27 }
 0x322   : > { %2641 = vmatmul.msk.f32.gmra.mxu0 %vm301_vm8, %v2044_v40 }
 0x323   : > { %v2022_v29 = vadd.f32 %v1954_v48, %v1864_v3 }
 0x324   : > { %2575 = vmatmul.msk.f32.gmra.mxu2 %vm301_vm8, %v474_v17  ;;  %2608 = vmatmul.msk.f32.gmra.mxu3 %vm301_vm8, %v1887_v0 }
 0x325   : > { %v1648_v36 = vpop.f32.mrf.mxu1  ;;  %v2179_v50 = vadd.f32 %v2111_v5, %v2022_v29 }
 0x326   : > { %v1712_v41 = vadd.f32 %v1648_v36, %v3872_v24 }
 0x327   : > { %v2117_v47 = vpop.f32.mrf.mxu0  ;;  %2211 = vxpose.xlu0.b32.cont [15/16] (narrow) %v2179_v50, 8 }
 0x328   : > { %v1799_v63 = vpop.f32.mrf.mxu2  ;;  %v1957_v56 = vpop.f32.mrf.mxu3 }
 0x329   : > { %v1865_v15 = vadd.f32 %v1799_v63, %v1711_v49 }
 0x32b   : > { %v2023_v57 = vadd.f32 %v1957_v56, %v1865_v15 }
 0x32d   : > { %v1651_v31 = vpop.f32.mrf.mxu1  ;;  %v2180_v45 = vadd.f32 %v2114_v9, %v2023_v57 }
 0x32e   : > { %v1713_v59 = vadd.f32 %v1651_v31, %v3883_v10 }
 0x32f   : > { %v2120_v26 = vpop.f32.mrf.mxu0  ;;  %2212 = vxpose.xlu0.b32.end [16/16] (narrow) %v2180_v45, 8 }
 0x330   : > { %v1802_v53 = vpop.f32.mrf.mxu2  ;;  %v1960_v16 = vpop.f32.mrf.mxu3 }
 0x331   : > { %v1866_v6 = vadd.f32 %v1802_v53, %v1712_v41 }
 0x333   : > { %v2024_v39 = vadd.f32 %v1960_v16, %v1866_v6 }
 0x335   : > { %v1654_v22 = vpop.f32.mrf.mxu1  ;;  %v2181_v17 = vadd.f32 %v2117_v47, %v2024_v39 }
 0x336   : > { %v1714_v24 = vadd.f32 %v1654_v22, %v3894_v28  ;;  %v2261_v22 = vld [vmem:[%s4181_s3] sm:$0xff] }
 0x337   : > { %v2123_v62 = vpop.f32.mrf.mxu0  ;;  %2229 = vxpose.xlu1.b32.start [1/16] (narrow) %v2181_v17, 8 }
 0x338   : > { %v1805_v25 = vpop.f32.mrf.mxu2  ;;  %v1963_v55 = vpop.f32.mrf.mxu3 }
 0x339   : > { %v1867_v23 = vadd.f32 %v1805_v25, %v1713_v59 }
 0x33b   : > { %v2025_v5 = vadd.f32 %v1963_v55, %v1867_v23 }
 0x33d   : > { %v1657_v1 = vpop.f32.mrf.mxu1  ;;  %v2182_v11 = vadd.f32 %v2120_v26, %v2025_v5  ;;  %v2702_v26 = vmov 0  }
 0x33e   : > { %v1715_v10 = vadd.f32 %v1657_v1, %v3905_v13  ;;  %2664 = vset.pattern.permute.xlu2 %v2702_v26 }
 0x33f   : > { %v2126_v21 = vpop.f32.mrf.mxu0  ;;  %2230 = vxpose.xlu1.b32.cont [2/16] (narrow) %v2182_v11, 8  ;;  %2264 = vperm.xlu2 %2664, %v2261_v22  }
 0x340   : > { %v1808_v37 = vpop.f32.mrf.mxu2  ;;  %v1966_v2 = vpop.f32.mrf.mxu3 }
 0x341   : > { %v1868_v51 = vadd.f32 %v1808_v37, %v1714_v24 }
 0x343   : > { %v2026_v8 = vadd.f32 %v1966_v2, %v1868_v51 }
 0x345   : > { %v1660_v38 = vpop.f32.mrf.mxu1  ;;  %v2183_v42 = vadd.f32 %v2123_v62, %v2026_v8 }
 0x346   : > { %v1716_v28 = vadd.f32 %v1660_v38, %v3915_v30 }
 0x347   : > { %v2129_v34 = vpop.f32.mrf.mxu0  ;;  %2231 = vxpose.xlu1.b32.cont [3/16] (narrow) %v2183_v42, 8 }
 0x348   : > { %v1811_v35 = vpop.f32.mrf.mxu2  ;;  %v1969_v43 = vpop.f32.mrf.mxu3 }
 0x349   : > { %v1869_v7 = vadd.f32 %v1811_v35, %v1715_v10 }
 0x34b   : > { %v2027_v9 = vadd.f32 %v1969_v43, %v1869_v7 }
 0x34d   : > { %v1663_v33 = vpop.f32.mrf.mxu1  ;;  %v2184_v20 = vadd.f32 %v2126_v21, %v2027_v9 }
 0x34e   : > { %v1717_v13 = vadd.f32 %v1663_v33, %v3925_v54 }
 0x34f   : > { %v2132_v40 = vpop.f32.mrf.mxu0  ;;  %2232 = vxpose.xlu1.b32.cont [4/16] (narrow) %v2184_v20, 8 }
 0x350   : > { %v1814_v27 = vpop.f32.mrf.mxu2  ;;  %v1972_v44 = vpop.f32.mrf.mxu3 }
 0x351   : > { %v1870_v58 = vadd.f32 %v1814_v27, %v1716_v28 }
 0x353   : > { %v2028_v3 = vadd.f32 %v1972_v44, %v1870_v58 }
 0x355   : > { %v1666_v36 = vpop.f32.mrf.mxu1  ;;  %v2185_v48 = vadd.f32 %v2129_v34, %v2028_v3 }
 0x356   : > { %v1718_v30 = vadd.f32 %v1666_v36, %v3935_v19 }
 0x357   : > { %v2135_v29 = vpop.f32.mrf.mxu0  ;;  %2233 = vxpose.xlu1.b32.cont [5/16] (narrow) %v2185_v48, 8 }
 0x358   : > { %v1817_v47 = vpop.f32.mrf.mxu2  ;;  %v1975_v31 = vpop.f32.mrf.mxu3 }
 0x359   : > { %v1871_v50 = vadd.f32 %v1817_v47, %v1717_v13 }
 0x35b   : > { %v2029_v49 = vadd.f32 %v1975_v31, %v1871_v50 }
 0x35d   : > { %v1669_v0 = vpop.f32.mrf.mxu1  ;;  %v2186_v63 = vadd.f32 %v2132_v40, %v2029_v49 }
 0x35e   : > { %v1719_v16 = vadd.f32 %v1669_v0, %v3945_v32 }
 0x35f   : > { %v2138_v15 = vpop.f32.mrf.mxu0  ;;  %2234 = vxpose.xlu1.b32.cont [6/16] (narrow) %v2186_v63, 8 }
 0x360   : > { %v1820_v57 = vpop.f32.mrf.mxu2  ;;  %v1978_v54 = vpop.f32.mrf.mxu3 }
 0x361   : > { %v1872_v45 = vadd.f32 %v1820_v57, %v1718_v30 }
 0x363   : > { %v2030_v41 = vadd.f32 %v1978_v54, %v1872_v45 }
 0x365   : > { %v1672_v56 = vpop.f32.mrf.mxu1  ;;  %v2187_v53 = vadd.f32 %v2135_v29, %v2030_v41 }
 0x366   : > { %v1720_v23 = vadd.f32 %v1672_v56, %v3955_v12 }
 0x367   : > { %v2141_v6 = vpop.f32.mrf.mxu0  ;;  %2235 = vxpose.xlu1.b32.cont [7/16] (narrow) %v2187_v53, 8 }
 0x368   : > { %v1823_v39 = vpop.f32.mrf.mxu2  ;;  %v1981_v62 = vpop.f32.mrf.mxu3 }
 0x369   : > { %v1873_v19 = vadd.f32 %v1823_v39, %v1719_v16 }
 0x36b   : > { %v2031_v1 = vadd.f32 %v1981_v62, %v1873_v19 }
 0x36d   : > { %v1675_v17 = vpop.f32.mrf.mxu1  ;;  %v2188_v59 = vadd.f32 %v2138_v15, %v2031_v1 }
 0x36e   : > { %v1721_v37 = vadd.f32 %v1675_v17, %v3965_v60 }
 0x36f   : > { %v2144_v25 = vpop.f32.mrf.mxu0  ;;  %2236 = vxpose.xlu1.b32.cont [8/16] (narrow) %v2188_v59, 8  ;;  %v2213_v59 = vpop.trf.xlu0 }
 0x370   : > { %v1826_v55 = vpop.f32.mrf.mxu2  ;;  %v1984_v11 = vpop.f32.mrf.mxu3 }
 0x371   : > { %v1874_v5 = vadd.f32 %v1826_v55, %v1720_v23 }
 0x373   : > { %v2032_v38 = vadd.f32 %v1984_v11, %v1874_v5 }
 0x375   : > { %v1678_v21 = vpop.f32.mrf.mxu1  ;;  %v2189_v24 = vadd.f32 %v2141_v6, %v2032_v38 }
 0x376   : > { %v1722_v10 = vadd.f32 %v1678_v21, %v3975_v4 }
 0x377   : > { %2237 = vxpose.xlu1.b32.cont [9/16] (narrow) %v2189_v24, 8  ;;  %v2147_v51 = vpop.f32.mrf.mxu0 }
 0x378   : > { %v1829_v32 = vpop.f32.mrf.mxu2  ;;  %v1987_v8 = vpop.f32.mrf.mxu3 }
 0x379   : > { %v1875_v2 = vadd.f32 %v1829_v32, %v1721_v37 }
 0x37b   : > { %v2033_v42 = vadd.f32 %v1987_v8, %v1875_v2 }
 0x37d   : > { %v1681_v34 = vpop.f32.mrf.mxu1  ;;  %v2190_v33 = vadd.f32 %v2144_v25, %v2033_v42 }
 0x37e   : > { %v1723_v60 = vadd.f32 %v1681_v34, %v3985_v61 }
 0x37f   : > { %2238 = vxpose.xlu1.b32.cont [10/16] (narrow) %v2190_v33, 8  ;;  %v2150_v43 = vpop.f32.mrf.mxu0 }
 0x380   : > { %v1832_v12 = vpop.f32.mrf.mxu2  ;;  %v1990_v7 = vpop.f32.mrf.mxu3 }
 0x381   : > { %v1876_v35 = vadd.f32 %v1832_v12, %v1722_v10 }
 0x383   : > { %v2034_v9 = vadd.f32 %v1990_v7, %v1876_v35 }
 0x385   : > { %v2191_v20 = vadd.f32 %v2147_v51, %v2034_v9  ;;  %v1684_v40 = vpop.f32.mrf.mxu1 }
 0x386   : > { %v1724_v48 = vadd.f32 %v1684_v40, %v3995_v52 }
 0x387   : > { %2239 = vxpose.xlu1.b32.cont [11/16] (narrow) %v2191_v20, 8  ;;  %v2153_v44 = vpop.f32.mrf.mxu0 }
 0x388   : > { %v1835_v36 = vpop.f32.mrf.mxu2  ;;  %v1993_v27 = vpop.f32.mrf.mxu3 }
 0x389   : > { %v1877_v28 = vadd.f32 %v1835_v36, %v1723_v60 }
 0x38b   : > { %v2035_v58 = vadd.f32 %v1993_v27, %v1877_v28 }
 0x38d   : > { %v2192_v3 = vadd.f32 %v2150_v43, %v2035_v58  ;;  %v1687_v29 = vpop.f32.mrf.mxu1 }
 0x38e   : > { %v1725_v61 = vadd.f32 %v1687_v29, %v4005_v18 }
 0x38f   : > { %2240 = vxpose.xlu1.b32.cont [12/16] (narrow) %v2192_v3, 8  ;;  %v2156_v31 = vpop.f32.mrf.mxu0 }
 0x390   : > { %v1838_v4 = vpop.f32.mrf.mxu2  ;;  %v1996_v13 = vpop.f32.mrf.mxu3 }
 0x391   : > { %v1878_v0 = vadd.f32 %v1838_v4, %v1724_v48 }
 0x393   : > { %v2036_v47 = vadd.f32 %v1996_v13, %v1878_v0 }
 0x395   : > { %v2193_v50 = vadd.f32 %v2153_v44, %v2036_v47  ;;  %v1690_v15 = vpop.f32.mrf.mxu1 }
 0x396   : > { %2665 = vset.pattern.permute.xlu0 %v2702_v26  ;;  %v1726_v52 = vadd.f32 %v1690_v15, %v4015_v14 }
 0x397   : > { %2241 = vxpose.xlu1.b32.cont [13/16] (narrow) %v2193_v50, 8  ;;  %v2159_v22 = vpop.f32.mrf.mxu0 }
 0x398   : > { %v1841_v49 = vpop.f32.mrf.mxu2  ;;  %v1999_v56 = vpop.f32.mrf.mxu3 }
 0x399   : > { %v1879_v63 = vadd.f32 %v1841_v49, %v1725_v61  ;;  %v2265_v14 = vpop.permute.xlu2 %2264 }
 0x39a   : > { %v2267_v25 = vadd.f32 %v2265_v14, %v2213_v59 }
 0x39b   : > { %v2037_v30 = vadd.f32 %v1999_v56, %v1879_v63 }
 0x39c   : > { %2269 = vst [vmem:[%s198_s20] sm:$0xff] %v2267_v25 }
 0x39d   : > { %v2194_v57 = vadd.f32 %v2156_v31, %v2037_v30  ;;  %v1693_v6 = vpop.f32.mrf.mxu1 }
 0x39e   : > { %v1727_v18 = vadd.f32 %v1693_v6, %v4025_v46 }
 0x39f   : > { %2242 = vxpose.xlu1.b32.cont [14/16] (narrow) %v2194_v57, 8  ;;  %v2162_v19 = vpop.f32.mrf.mxu0 }
 0x3a0   : > { %v1844_v45 = vpop.f32.mrf.mxu2  ;;  %v2002_v41 = vpop.f32.mrf.mxu3 }
 0x3a1   : > { %v1880_v54 = vadd.f32 %v1844_v45, %v1726_v52 }
 0x3a3   : > { %v2038_v53 = vadd.f32 %v2002_v41, %v1880_v54 }
 0x3a5   : > { %v2195_v26 = vadd.f32 %v2159_v22, %v2038_v53 }
 0x3a7   : > { %2243 = vxpose.xlu1.b32.cont [15/16] (narrow) %v2195_v26, 8 }
 0x3a8   : > { %v1847_v16 = vpop.f32.mrf.mxu2  ;;  %v2005_v17 = vpop.f32.mrf.mxu3 }
 0x3a9   : > { %v1881_v39 = vadd.f32 %v1847_v16, %v1727_v18 }
 0x3ab   : > { %v2039_v62 = vadd.f32 %v2005_v17, %v1881_v39 }
 0x3ad   : > { %v2196_v1 = vadd.f32 %v2162_v19, %v2039_v62 }
 0x3af   : > { %2244 = vxpose.xlu1.b32.end [16/16] (narrow) %v2196_v1, 8 }
 0x3db   : > { %v2245_v23 = vpop.trf.xlu1 }
 0x3dc   : > { %v2268_v55 = vadd.f32 %v2265_v14, %v2245_v23 }
 0x3de   : > { %2270 = vst [vmem:[%s198_s20 + $0x8] sm:$0xff] %v2268_v55 }
 0x3df PF: > { %s15_s17 = sadd.s32 1, %s2698_s17  }
 0x3e0   : > { %p12_p5 = scmp.ge.s32.totalorder %s15_s17, 4  }
 0x3e2   :  { %14 = sbr.rel (!%p12_p5) target bundleno = 2 (0x2), region = 67 }

</bundles_post_ra>
